<compile_context>
chip_gen: v7x
topology: tpu7x:2x2x1
jax: 0.10.0
libtpu: 0.0.40
codegen_flags: <defaults>
</compile_context>

<pallas_src>
import jax
import jax.numpy as jnp
import numpy as np
from jax.experimental import pallas as pl
from jax.experimental.pallas import tpu as pltpu


def _attn_readout_kernel(feat_ref,    # VMEM (TB*S, D)  raw node features (f32 or bf16)
                         counts_ref,  # VMEM (TB, 1)    int32 real-node counts (>= 1)
                         v_ref,       # VMEM (TB, H)    fc_v(BN(feat[last])) + bv + shift@wu
                         w_ref,       # VMEM (D, H+O)   [BN-folded fc_u | BN-folded fc_out]
                         we_ref,      # VMEM (1, H)     attn_e weight as a row
                         bout_ref,    # VMEM (1, O)     BN-folded fc_out bias (= shift @ wout)
                         out_ref):    # VMEM (TB, O)
    TB = counts_ref.shape[0]
    rows = feat_ref.shape[0]
    S = rows // TB
    H = v_ref.shape[1]
    O = out_ref.shape[1]

    # One MXU matmul per grid step: projects all TB*S nodes through BOTH fc_u and fc_out.
    y = jnp.dot(feat_ref[...], w_ref[...],
                preferred_element_type=jnp.float32)              # [TB*S, H+O] f32

    # e = attn_e(sigmoid(feat_u + feat_v)) -- N=1 matmul replaced by VPU mul + lane reduce.
    u = y[:, :H].reshape(TB, S, H)                               # fc_u part (bias folded in v)
    s = jax.nn.sigmoid(u + v_ref[...][:, None, :])               # [TB, S, H]
    e = jnp.sum(s * we_ref[...], axis=-1)                        # [TB, S]

    # Per-graph masked softmax over the S node slots (dgl.softmax_nodes).
    node_idx = jax.lax.broadcasted_iota(jnp.int32, (TB, S), 1)
    mask = node_idx < counts_ref[...]                            # [TB, S] bool
    e = jnp.where(mask, e, jnp.float32(-1e30))
    m = jnp.max(e, axis=1, keepdims=True)                        # [TB, 1]
    p = jnp.exp(e - m) * mask.astype(jnp.float32)                # [TB, S]
    denom = jnp.sum(p, axis=1, keepdims=True)                    # [TB, 1]
    alpha = p / denom      # exact divide: keeps sum(alpha)==1 so the bout fold is exact

    # Attention-weighted sum of the ALREADY fc_out-projected features
    # (dgl.sum_nodes followed by fc_out, fused through the merged matmul above).
    yo = y[:, H:].reshape(TB, S, O)                              # fc_out part
    rst = jnp.sum(yo * alpha[:, :, None], axis=1)                # [TB, O]
    out_ref[...] = (rst + bout_ref[...]).astype(out_ref.dtype)
    # TODO(synk): out block uses O=16 of 128 lanes (masked vst); only worth reworking if a
    # bundle dump shows stores on the critical path.


def attn_readout(feat, counts, last_idx, scale, shift, wu, wv, bv, we, wout,
                 tb=32, matmul_dtype=jnp.float32):
    """feat [B,S,D] f32, counts [B] i32, last_idx [B] i32 -> [B, O] f32.

    scale/shift are the folded BatchNorm affine (1D, length D).  matmul_dtype controls the
    MXU operand dtype only (bf16 recommended on v6e/v7x); softmax / reductions stay f32.
    """
    B, S, D = feat.shape
    H = wu.shape[1]
    O = wout.shape[1]
    tb = min(tb, B)
    assert (tb * S) % 8 == 0, "tb*S must be a multiple of 8 (sublane tiling)"

    scale_row = scale.reshape(1, D)
    shift_row = shift.reshape(1, D)
    scale_col = scale.reshape(D, 1)

    # --- fold the BN affine into the weights; merge fc_u and fc_out into one matmul ------
    wu_f = scale_col * wu                                      # [D, H]
    bu = shift_row @ wu                                        # [1, H] (folded into v below)
    wout_f = scale_col * wout                                  # [D, O]
    bout = shift_row @ wout                                    # [1, O] (exact: sum(alpha)==1)
    w_merged = jnp.concatenate([wu_f, wout_f], axis=1)         # [D, H+O]

    # --- last-node path done once as a single [B, D] x [D, H] matmul ---------------------
    xl = feat[jnp.arange(B), last_idx]                         # [B, D]
    v = (xl * scale_row + shift_row) @ wv + bv.reshape(1, H) + bu   # [B, H]

    we_row = we.reshape(1, H)
    counts2d = jnp.maximum(counts.reshape(B, 1).astype(jnp.int32), 1)   # guard count==0

    # --- pad B up to a multiple of TB (padded graphs get count=1, zero features) ---------
    Bp = pl.cdiv(B, tb) * tb
    if Bp != B:
        pad = Bp - B
        feat = jnp.pad(feat, ((0, pad), (0, 0), (0, 0)))
        v = jnp.pad(v, ((0, pad), (0, 0)))
        counts2d = jnp.concatenate([counts2d, jnp.ones((pad, 1), jnp.int32)], axis=0)

    # Flatten feat in the wrapper so the kernel never reshapes the big operand; cast MXU
    # operands only (bf16 halves the dominant DMA on v6e/v7x, elementwise math stays f32).
    feat2d = feat.reshape(Bp * S, D).astype(matmul_dtype)
    w_merged = w_merged.astype(matmul_dtype)

    grid_spec = pltpu.PrefetchScalarGridSpec(
        num_scalar_prefetch=0,
        grid=(Bp // tb,),
        in_specs=[
            pl.BlockSpec((tb * S, D), lambda b: (b, 0)),     # feat (dominant DMA)
            pl.BlockSpec((tb, 1),     lambda b: (b, 0)),     # counts
            pl.BlockSpec((tb, H),     lambda b: (b, 0)),     # v (last-node path + bu)
            pl.BlockSpec((D, H + O),  lambda b: (0, 0)),     # merged fc_u|fc_out weight
            pl.BlockSpec((1, H),      lambda b: (0, 0)),     # attn_e row
            pl.BlockSpec((1, O),      lambda b: (0, 0)),     # folded fc_out bias
        ],
        out_specs=pl.BlockSpec((tb, O), lambda b: (b, 0)),
    )

    # TODO(synk): when scaling tb for real workloads, re-derive the VMEM budget per chip
    # (v7x: 64 MiB physical / 32 MiB scoped vs 128 MiB on v5e/v6e), set vmem_limit_bytes
    # explicitly, and mark the constant-index weight specs pipeline_mode=pl.Buffered(1).
    out = pl.pallas_call(
        _attn_readout_kernel,
        out_shape=jax.ShapeDtypeStruct((Bp, O), jnp.float32),
        grid_spec=grid_spec,
        compiler_params=pltpu.CompilerParams(
            dimension_semantics=("parallel",)),   # >=2 steps -> both v7x TensorCores busy
    )(feat2d, counts2d, v, w_merged, we_row, bout)
    return out[:B]


def _reference(feat, mask, last_idx, scale, shift, wu, wv, bv, we, wout):
    xn = feat * scale[None, None, :] + shift[None, None, :]         # [B,S,D]
    u = jnp.einsum("bsd,dh->bsh", xn, wu)
    xl = xn[jnp.arange(feat.shape[0]), last_idx]                    # [B,D]
    v = xl @ wv + bv                                                # [B,H]
    s = jax.nn.sigmoid(u + v[:, None, :])
    e = jnp.einsum("bsh,ho->bso", s, we)                            # [B,S,1]
    e = jnp.where(mask > 0, e, -1e30)
    m = jnp.max(e, axis=1, keepdims=True)
    p = jnp.exp(e - m) * mask
    alpha = p / jnp.sum(p, axis=1, keepdims=True)
    rst = jnp.sum(xn * alpha, axis=1)                               # [B,D]
    return rst @ wout


if __name__ == "__main__":
    # Sizes: input_dim=32, hidden_dim=32, output_dim=16, 64 graphs, max 8 nodes each.
    # tb=32 -> TB*S = 256 MXU rows per step (fills the v6e/v7x 256-row MXU) and a grid of
    # 2 "parallel" steps (both v7x TensorCores get work).
    B, S, D, H, O = 64, 8, 32, 32, 16
    TB = 32
    key = jax.random.PRNGKey(0)
    k_feat, k_g, k_b, k_wu, k_wv, k_bv, k_we, k_wo = jax.random.split(key, 8)

    counts_np = (np.arange(B) % S + 1).astype(np.int32)     # 1..8 real nodes per graph
    last_np = counts_np - 1                                 # last node index (local)
    mask_np = (np.arange(S)[None, :] < counts_np[:, None]).astype(np.float32)

    feat = jax.random.normal(k_feat, (B, S, D), jnp.float32)
    feat = feat * jnp.asarray(mask_np)[..., None]           # zero the padding
    mask = jnp.asarray(mask_np)[..., None]                  # [B,S,1]
    last_idx = jnp.asarray(last_np, jnp.int32)
    counts = jnp.asarray(counts_np, jnp.int32)

    # Deterministic parameter init (synthetic, not a checkpoint).
    gamma = 1.0 + 0.1 * jax.random.normal(k_g, (D,), jnp.float32)     # BN weight
    beta = 0.1 * jax.random.normal(k_b, (D,), jnp.float32)            # BN bias
    wu = jax.random.normal(k_wu, (D, H), jnp.float32) / np.sqrt(D)    # fc_u.weight^T
    wv = jax.random.normal(k_wv, (D, H), jnp.float32) / np.sqrt(D)    # fc_v.weight^T
    bv = 0.1 * jax.random.normal(k_bv, (1, H), jnp.float32)           # fc_v.bias
    we = jax.random.normal(k_we, (H, 1), jnp.float32) / np.sqrt(H)    # attn_e.weight^T
    wout = jax.random.normal(k_wo, (D, O), jnp.float32) / np.sqrt(D)  # fc_out.weight^T

    # BatchNorm1d (training-mode batch statistics over real nodes), folded to affine.
    eps = 1e-5
    flat_f = feat.reshape(B * S, D)
    flat_m = mask.reshape(B * S, 1)
    n_valid = jnp.sum(flat_m)
    mean = jnp.sum(flat_f * flat_m, axis=0) / n_valid
    var = jnp.sum(((flat_f - mean) ** 2) * flat_m, axis=0) / n_valid   # biased var
    scale = gamma / jnp.sqrt(var + eps)                                # [D]
    shift = beta - mean * scale                                        # [D]

    ref = _reference(feat, mask, last_idx, scale, shift, wu, wv, bv, we, wout)

    # f32 MXU operands: exact path, tight tolerance against the module reference.
    out_f32 = attn_readout(feat, counts, last_idx, scale, shift, wu, wv, bv, we, wout,
                           tb=TB, matmul_dtype=jnp.float32)
    out_f32 = jax.block_until_ready(out_f32)
    np.testing.assert_allclose(np.asarray(out_f32), np.asarray(ref), rtol=1e-4, atol=1e-4)

    # bf16 MXU operands (perf path for v6e/v7x): tolerance reflects bf16 operand rounding;
    # all softmax / reduction math stays f32 inside the kernel.
    out_bf16 = attn_readout(feat, counts, last_idx, scale, shift, wu, wv, bv, we, wout,
                            tb=TB, matmul_dtype=jnp.bfloat16)
    out_bf16 = jax.block_until_ready(out_bf16)
    np.testing.assert_allclose(np.asarray(out_bf16), np.asarray(ref), rtol=1e-1, atol=1e-1)

    print("KERNEL_OK")
</pallas_src>

<mosaic_0001>
module attributes {stable_mosaic.version = 11 : i64} {
  func.func @_attn_readout_kernel(%arg0: i32, %arg1: memref<256x32xf32, #tpu.memory_space<vmem>>, %arg2: memref<32x1xi32, #tpu.memory_space<vmem>>, %arg3: memref<32x32xf32, #tpu.memory_space<vmem>>, %arg4: memref<32x48xf32, #tpu.memory_space<vmem>>, %arg5: memref<1x32xf32, #tpu.memory_space<vmem>>, %arg6: memref<1x16xf32, #tpu.memory_space<vmem>>, %arg7: memref<32x16xf32, #tpu.memory_space<vmem>>) attributes {dimension_semantics = [#tpu.dimension_semantics<parallel>], iteration_bounds = array<i64: 2>, scalar_prefetch = 0 : i64, scratch_operands = 0 : i64, tpu.core_type = #tpu.core_type<tc>, window_params = [{transform_indices = @transform_0, window_bounds = array<i64: 256, 32>}, {transform_indices = @transform_1, window_bounds = array<i64: 32, 1>}, {transform_indices = @transform_2, window_bounds = array<i64: 32, 32>}, {pipeline_mode = #tpu.pipeline_mode<synchronous>, transform_indices = @transform_3, window_bounds = array<i64: 32, 48>}, {pipeline_mode = #tpu.pipeline_mode<synchronous>, transform_indices = @transform_4, window_bounds = array<i64: 1, 32>}, {pipeline_mode = #tpu.pipeline_mode<synchronous>, transform_indices = @transform_5, window_bounds = array<i64: 1, 16>}, {transform_indices = @transform_6, window_bounds = array<i64: 32, 16>}]} {
    %c0 = arith.constant 0 : index
    %c0_0 = arith.constant 0 : index
    %0 = vector.load %arg1[%c0, %c0_0] : memref<256x32xf32, #tpu.memory_space<vmem>>, vector<256x32xf32>
    %c0_1 = arith.constant 0 : index
    %c0_2 = arith.constant 0 : index
    %1 = vector.load %arg4[%c0_1, %c0_2] : memref<32x48xf32, #tpu.memory_space<vmem>>, vector<32x48xf32>
    %cst = arith.constant dense<0.000000e+00> : vector<256x48xf32>
    %2 = tpu.matmul %0, %1, %cst {dimension_numbers = #tpu.dot_dimension_numbers<[1], [0], [0], [1], [0, 0, 1, 1], [], []>} : vector<256x32xf32>, vector<32x48xf32>, vector<256x48xf32> -> vector<256x48xf32>
    %3 = vector.extract_strided_slice %2 {offsets = [0, 0], sizes = [256, 32], strides = [1, 1]} : vector<256x48xf32> to vector<256x32xf32>
    %4 = vector.shape_cast %3 : vector<256x32xf32> to vector<32x8x32xf32>
    %c0_3 = arith.constant 0 : index
    %c0_4 = arith.constant 0 : index
    %5 = vector.load %arg3[%c0_3, %c0_4] : memref<32x32xf32, #tpu.memory_space<vmem>>, vector<32x32xf32>
    %6 = vector.shape_cast %5 : vector<32x32xf32> to vector<32x1x32xf32>
    %7 = vector.broadcast %6 : vector<32x1x32xf32> to vector<32x8x32xf32>
    %8 = arith.addf %4, %7 : vector<32x8x32xf32>
    %9 = arith.negf %8 : vector<32x8x32xf32>
    %10 = math.exp %9 : vector<32x8x32xf32>
    %cst_5 = arith.constant 1.000000e+00 : f32
    %11 = vector.broadcast %cst_5 : f32 to vector<32x8x32xf32>
    %12 = arith.addf %11, %10 : vector<32x8x32xf32>
    %13 = arith.divf %11, %12 : vector<32x8x32xf32>
    %c0_6 = arith.constant 0 : index
    %c0_7 = arith.constant 0 : index
    %14 = vector.load %arg5[%c0_6, %c0_7] : memref<1x32xf32, #tpu.memory_space<vmem>>, vector<1x32xf32>
    %15 = vector.shape_cast %14 : vector<1x32xf32> to vector<1x1x32xf32>
    %16 = vector.broadcast %15 : vector<1x1x32xf32> to vector<32x8x32xf32>
    %17 = arith.mulf %13, %16 : vector<32x8x32xf32>
    %cst_8 = arith.constant dense<0.000000e+00> : vector<32x8xf32>
    %18 = vector.multi_reduction <add>, %17, %cst_8 [2] : vector<32x8x32xf32> to vector<32x8xf32>
    %19 = tpu.iota {dimensions = array<i32: 1>} : vector<32x8xi32>
    %c0_9 = arith.constant 0 : index
    %c0_10 = arith.constant 0 : index
    %20 = vector.load %arg2[%c0_9, %c0_10] : memref<32x1xi32, #tpu.memory_space<vmem>>, vector<32x1xi32>
    %21 = vector.broadcast %20 : vector<32x1xi32> to vector<32x8xi32>
    %22 = arith.cmpi slt, %19, %21 : vector<32x8xi32>
    %cst_11 = arith.constant -1.000000e+30 : f32
    %23 = vector.broadcast %cst_11 : f32 to vector<32x8xf32>
    %24 = arith.select %22, %18, %23 : vector<32x8xi1>, vector<32x8xf32>
    %cst_12 = arith.constant dense<0xFF800000> : vector<32xf32>
    %25 = vector.multi_reduction <maximumf>, %24, %cst_12 [1] : vector<32x8xf32> to vector<32xf32>
    %26 = vector.shape_cast %25 : vector<32xf32> to vector<32x1xf32>
    %27 = vector.broadcast %26 : vector<32x1xf32> to vector<32x8xf32>
    %28 = arith.subf %24, %27 : vector<32x8xf32>
    %29 = math.exp %28 : vector<32x8xf32>
    %30 = arith.extui %22 : vector<32x8xi1> to vector<32x8xi32>
    %31 = arith.sitofp %30 : vector<32x8xi32> to vector<32x8xf32>
    %32 = arith.mulf %29, %31 : vector<32x8xf32>
    %cst_13 = arith.constant dense<0.000000e+00> : vector<32xf32>
    %33 = vector.multi_reduction <add>, %32, %cst_13 [1] : vector<32x8xf32> to vector<32xf32>
    %34 = vector.shape_cast %33 : vector<32xf32> to vector<32x1xf32>
    %35 = vector.broadcast %34 : vector<32x1xf32> to vector<32x8xf32>
    %36 = arith.divf %32, %35 : vector<32x8xf32>
    %37 = vector.extract_strided_slice %2 {offsets = [0, 32], sizes = [256, 16], strides = [1, 1]} : vector<256x48xf32> to vector<256x16xf32>
    %38 = vector.shape_cast %37 : vector<256x16xf32> to vector<32x8x16xf32>
    %39 = vector.shape_cast %36 : vector<32x8xf32> to vector<32x8x1xf32>
    %40 = vector.broadcast %39 : vector<32x8x1xf32> to vector<32x8x16xf32>
    %41 = arith.mulf %38, %40 : vector<32x8x16xf32>
    %cst_14 = arith.constant dense<0.000000e+00> : vector<32x16xf32>
    %42 = vector.multi_reduction <add>, %41, %cst_14 [1] : vector<32x8x16xf32> to vector<32x16xf32>
    %c0_15 = arith.constant 0 : index
    %c0_16 = arith.constant 0 : index
    %43 = vector.load %arg6[%c0_15, %c0_16] : memref<1x16xf32, #tpu.memory_space<vmem>>, vector<1x16xf32>
    %44 = vector.broadcast %43 : vector<1x16xf32> to vector<32x16xf32>
    %45 = arith.addf %42, %44 : vector<32x16xf32>
    %c0_17 = arith.constant 0 : index
    %c0_18 = arith.constant 0 : index
    %46 = vector.load %arg7[%c0_17, %c0_18] : memref<32x16xf32, #tpu.memory_space<vmem>>, vector<32x16xf32>
    tpu.vector_store %arg7[%c0_17, %c0_18], %45 {strides = array<i32>} : memref<32x16xf32, #tpu.memory_space<vmem>>, vector<32x16xf32>,
    return
  }
  func.func @transform_0(%arg0: i32) -> (i32, i32) {
    %c0_i32 = arith.constant 0 : i32
    %c0_i32_0 = arith.constant 0 : i32
    return %arg0, %c0_i32 : i32, i32
  }
  func.func @transform_1(%arg0: i32) -> (i32, i32) {
    %c0_i32 = arith.constant 0 : i32
    %c0_i32_0 = arith.constant 0 : i32
    return %arg0, %c0_i32 : i32, i32
  }
  func.func @transform_2(%arg0: i32) -> (i32, i32) {
    %c0_i32 = arith.constant 0 : i32
    %c0_i32_0 = arith.constant 0 : i32
    return %arg0, %c0_i32 : i32, i32
  }
  func.func @transform_3(%arg0: i32) -> (i32, i32) {
    %c0_i32 = arith.constant 0 : i32
    %c0_i32_0 = arith.constant 0 : i32
    %c0_i32_1 = arith.constant 0 : i32
    return %c0_i32, %c0_i32_0 : i32, i32
  }
  func.func @transform_4(%arg0: i32) -> (i32, i32) {
    %c0_i32 = arith.constant 0 : i32
    %c0_i32_0 = arith.constant 0 : i32
    %c0_i32_1 = arith.constant 0 : i32
    return %c0_i32, %c0_i32_0 : i32, i32
  }
  func.func @transform_5(%arg0: i32) -> (i32, i32) {
    %c0_i32 = arith.constant 0 : i32
    %c0_i32_0 = arith.constant 0 : i32
    %c0_i32_1 = arith.constant 0 : i32
    return %c0_i32, %c0_i32_0 : i32, i32
  }
  func.func @transform_6(%arg0: i32) -> (i32, i32) {
    %c0_i32 = arith.constant 0 : i32
    %c0_i32_0 = arith.constant 0 : i32
    return %arg0, %c0_i32 : i32, i32
  }
}

</mosaic_0001>

<bundles_post_ra>
// kernel: tpu_custom_call.1
= control target key start
LH: loop header
LB: loop body
LE: loop exit
PB: predicated region body
PF: predicated region fallthrough
CT: control target
= control target key end

     0   :  { %s2769_s21 = smov 0   ;;  %s3572_s0 = inlined_call_operand.vmem [shape: f32[512,32], index: 0, kind: input, shape index: {}]   ;;  %s3573_s1 = inlined_call_operand.vmem [shape: s32[64,1], index: 1, kind: input, shape index: {}]   ;;  %s3574_s2 = inlined_call_operand.vmem [shape: f32[64,32], index: 2, kind: input, shape index: {}]   ;;  %s3575_s3 = inlined_call_operand.vmem [shape: f32[32,48], index: 3, kind: input, shape index: {}]   ;;  %s3576_s4 = inlined_call_operand.vmem [shape: f32[1,32], index: 4, kind: input, shape index: {}]   ;;  %s3577_s5 = inlined_call_operand.vmem [shape: f32[1,16], index: 5, kind: input, shape index: {}]   ;;  %s3578_s6 = inlined_call_operand.vmem [shape: f32[64,16], index: 6, kind: output, shape index: {}]  }
   0x1 LB: > { %s2369_s22 = sadd.s32 4294967295, %s2727_s21   ;;  %p2373_p0 = scmp.ge.s32.totalorder %s2727_s21, 1  ;;  %s2727_s21 = sphi %s2769_s21, %s16_s21  }
   0x2   : > { %p235_p1 = scmp.lt.s32.totalorder %s2727_s21, 3 }
   0x4   : > { %p236_p2 = pnand %p2373_p0, %p235_p1 }
   0x6   : > { %239 = sbr.rel (%p236_p2) target bundleno = 1123 (0x463), region = 44 }
   0xd   : > { %v331_v0 = vld [vmem:[%s3575_s3] sm:$0xff]  ;;  %v332_v1 = vld [vmem:[%s3575_s3 + $0x8] sm:$0xff]  ;;  %v333_v2 = vld [vmem:[%s3575_s3 + $0x10] sm:$0xff]  ;;  %s2374_s29 = sshll.u32 %s2369_s22, 5  ;;  %vm335_vm0 = vcmask 261120   ;;  %s2376_s12 = sshll.u32 %s2369_s22, 2  ;;  %v3579_v41 = vlaneseq }
   0xe   : > { %v2546_v3 = vpack.c.bf16 %v332_v1, %v331_v0  ;;  %v334_v4 = vld [vmem:[%s3575_s3 + $0x18] sm:$0xff]  ;;  %p276_p3 = scmp.lt.s32.totalorder %s2374_s29, 63  ;;  %p282_p4 = scmp.lt.s32.totalorder %s2376_s12, 7  ;;  %v2729_v38 = vmov 0   ;;  %v2730_v39 = vmov 1966171168  }
   0xf   : > { %v2550_v5 = vpack.c.bf16 %v334_v4, %v333_v2  ;;  %2572 = vset.pattern.permute.xlu1 %v2729_v38  ;;  %2571 = vset.pattern.permute.xlu0 %v2729_v38  ;;  %v667_v40 = vunpack.c.l.s4 %v2730_v39  ;;  %v2865_v43 = vshrl.u32 %v3579_v41, 7  ;;  %vm1562_vm1 = vcmask 1041409   ;;  %s2732_s25 = smov 32   ;;  %s2733_s26 = smov 96  }
  0x10   : > { %2547 = vmatprep.subr.bf16.mxu0 %v2546_v3  ;;  %2554 = vmatprep.subr.bf16.mxu1 %v2546_v3  ;;  %s3611_s29 = smov (!%p276_p3, %s2374_s29), 63  ;;  %s3613_s12 = smov (!%p282_p4, %s2376_s12), 7  ;;  %vm1564_vm2 = vcmask 1042434   ;;  %vm1566_vm3 = vcmask 1043459   ;;  %vm1568_vm4 = vcmask 1044484   ;;  %vm1570_vm5 = vcmask 1045509  }
  0x11   : > { %2549 = vmatpush3.bf16.msra.mxu0 %v2546_v3  ;;  %2556 = vmatpush3.bf16.msra.mxu1 %v2546_v3  ;;  %s2375_s8 = sshll.u32 %s3611_s29, 3  ;;  %s2862_s13 = sshll.u32 %s3613_s12, 3  ;;  %v668_v42 = vunpack.c.0.s8 %v667_v40  ;;  %v2884_v57 = vsub.s32 0, %v2865_v43  ;;  %vm1572_vm6 = vcmask 1046534   ;;  %vm1574_vm7 = vcmask 1047559  }
  0x12   : > { %2551 = vmatprep.subr.bf16.mxu0 %v2550_v5  ;;  %2555 = vmatprep.subr.bf16.mxu1 %v2550_v5  ;;  %s2794_s11 = scalar_lea.vmem %s3572_s0, %s2375_s8  ;;  %s2871_s16 = scalar_lea.vmem %s3574_s2, %s2862_s13  ;;  %vm1605_vm8 = vcmask 64512   ;;  %vm1918_vm13 = vcmask 392448   ;;  %vm2284_vm14 = vcmask 130048  }
  0x13   : > { %v299_v6 = vld [vmem:[%s2794_s11] sm:$0xff]  ;;  %v300_v8 = vld [vmem:[%s2794_s11 + $0x8] sm:$0xff]  ;;  %v301_v10 = vld [vmem:[%s2794_s11 + $0x10] sm:$0xff]  ;;  %v2874_v44 = vsub.s32 %v668_v42, %v2865_v43  ;;  %s285_s22 = scalar_lea.vmem %s3573_s1, %s2862_s13  ;;  %s297_s29 = scalar_lea.vmem %s3578_s6, %s2862_s13 }
  0x14   : > { %v315_v7 = vld [vmem:[%s2794_s11 + $0x80] sm:$0xff]  ;;  %v316_v9 = vld [vmem:[%s2794_s11 + $0x88] sm:$0xff]  ;;  %2498 = vmatprep.mubr.msk.f32.mxu0 %vm335_vm0, %v299_v6  ;;  %v317_v11 = vld [vmem:[%s2794_s11 + $0x90] sm:$0xff] }
  0x15   : > { %2553 = vmatpush3.bf16.msra.mxu0 %v2550_v5  ;;  %2557 = vmatpush3.bf16.msra.mxu1 %v2550_v5  ;;  %v302_v12 = vld [vmem:[%s2794_s11 + $0x18] sm:$0xff]  ;;  %v303_v14 = vld [vmem:[%s2794_s11 + $0x20] sm:$0xff]  ;;  %v304_v16 = vld [vmem:[%s2794_s11 + $0x28] sm:$0xff] }
  0x16   : > { %2522 = vmatprep.mubr.msk.f32.mxu1 %vm335_vm0, %v315_v7  ;;  %v318_v13 = vld [vmem:[%s2794_s11 + $0x98] sm:$0xff]  ;;  %v319_v15 = vld [vmem:[%s2794_s11 + $0xa0] sm:$0xff]  ;;  %v320_v17 = vld [vmem:[%s2794_s11 + $0xa8] sm:$0xff] }
  0x17   : > { %v321_v18 = vld [vmem:[%s2794_s11 + $0xb0] sm:$0xff]  ;;  %v322_v20 = vld [vmem:[%s2794_s11 + $0xb8] sm:$0xff]  ;;  %v323_v22 = vld [vmem:[%s2794_s11 + $0xc0] sm:$0xff] }
  0x18   : > { %2499 = vmatmul.mubr.msk.f32.vlgmr.msra.gmra.mrb[0].mxu0 %vm335_vm0, %v300_v8  ;;  %2523 = vmatmul.mubr.msk.f32.vlgmr.msra.gmra.mrb[0].mxu1 %vm335_vm0, %v316_v9  ;;  %v305_v19 = vld [vmem:[%s2794_s11 + $0x30] sm:$0xff]  ;;  %v306_v21 = vld [vmem:[%s2794_s11 + $0x38] sm:$0xff]  ;;  %v307_v23 = vld [vmem:[%s2794_s11 + $0x40] sm:$0xff] }
  0x19   : > { %2501 = vmatprep.mubr.msk.f32.mxu0 %vm335_vm0, %v301_v10  ;;  %2525 = vmatprep.mubr.msk.f32.mxu1 %vm335_vm0, %v317_v11  ;;  %v324_v24 = vld [vmem:[%s2794_s11 + $0xc8] sm:$0xff]  ;;  %v325_v26 = vld [vmem:[%s2794_s11 + $0xd0] sm:$0xff]  ;;  %v326_v28 = vld [vmem:[%s2794_s11 + $0xd8] sm:$0xff] }
  0x1a   : > { %v308_v25 = vld [vmem:[%s2794_s11 + $0x48] sm:$0xff]  ;;  %v309_v27 = vld [vmem:[%s2794_s11 + $0x50] sm:$0xff]  ;;  %v310_v29 = vld [vmem:[%s2794_s11 + $0x58] sm:$0xff] }
  0x1b   : > { %v311_v30 = vld [vmem:[%s2794_s11 + $0x60] sm:$0xff]  ;;  %v312_v32 = vld [vmem:[%s2794_s11 + $0x68] sm:$0xff]  ;;  %v313_v34 = vld [vmem:[%s2794_s11 + $0x70] sm:$0xff] }
  0x1c   : > { %2502 = vmatmul.mubr.msk.f32.gmra.mrb[2].mxu0 %vm335_vm0, %v302_v12  ;;  %2526 = vmatmul.mubr.msk.f32.gmra.mrb[2].mxu1 %vm335_vm0, %v318_v13  ;;  %v327_v31 = vld [vmem:[%s2794_s11 + $0xe0] sm:$0xff]  ;;  %v328_v33 = vld [vmem:[%s2794_s11 + $0xe8] sm:$0xff]  ;;  %v329_v35 = vld [vmem:[%s2794_s11 + $0xf0] sm:$0xff] }
  0x1d   : > { %2504 = vmatprep.mubr.msk.f32.mxu0 %vm335_vm0, %v303_v14  ;;  %2528 = vmatprep.mubr.msk.f32.mxu1 %vm335_vm0, %v319_v15  ;;  %v314_v36 = vld [vmem:[%s2794_s11 + $0x78] sm:$0xff]  ;;  %v657_v45 = vld [vmem:[%s2871_s16] sm:$0xff]  ;;  %v659_v46 = vld [vmem:[%s2871_s16 + $0x10] sm:$0xff] }
  0x1e   : > { %v330_v37 = vld [vmem:[%s2794_s11 + $0xf8] sm:$0xff]  ;;  %v763_v47 = vcombine.high %v659_v46, %v659_v46  ;;  %v672_v48 = vrot.slane %v657_v45, %v2874_v44  ;;  %v770_v49 = vrot.slane %v659_v46, %v2874_v44  ;;  %v665_v50 = vcombine.high %v657_v45, %v657_v45 }
  0x1f   : > { %v2901_v7 = vld [vmem:[%s2871_s16 + $0x18] sm:$0xff] }
  0x20   : > { %2505 = vmatmul.mubr.msk.f32.gmra.mrb[4].mxu0 %vm335_vm0, %v304_v16  ;;  %2529 = vmatmul.mubr.msk.f32.gmra.mrb[4].mxu1 %vm335_vm0, %v320_v17  ;;  %v777_v51 = vrot.slane %v763_v47, %v2874_v44  ;;  %v680_v52 = vcombine.high %v672_v48, %v672_v48  ;;  %v778_v53 = vcombine.high %v770_v49, %v770_v49 }
  0x21   : > { %2531 = vmatprep.mubr.msk.f32.mxu1 %vm335_vm0, %v321_v18  ;;  %2507 = vmatprep.mubr.msk.f32.mxu0 %vm335_vm0, %v305_v19  ;;  %v679_v54 = vrot.slane %v665_v50, %v2874_v44  ;;  %v688_v60 = vrot.slane %v672_v48, %v2874_v44  ;;  %v786_v61 = vrot.slane %v770_v49, %v2874_v44 }
  0x22   : > { %v779_v55 = vcombine.high %v777_v51, %v777_v51  ;;  %v702_v56 = vrot.slane %v680_v52, %v2874_v44  ;;  %v800_v58 = vrot.slane %v778_v53, %v2874_v44  ;;  %v2906_v10 = vrot.slane %v777_v51, %v2874_v44 }
  0x23   : > { %v681_v59 = vcombine.high %v679_v54, %v679_v54  ;;  %v710_v0 = vcombine.high %v688_v60, %v688_v60  ;;  %v808_v2 = vcombine.high %v786_v61, %v786_v61  ;;  %v2898_v6 = vrot.slane %v679_v54, %v2874_v44 }
  0x24   : > { %2532 = vmatmul.mubr.msk.f32.gmra.mrb[6].mxu1 %vm335_vm0, %v322_v20  ;;  %2508 = vmatmul.mubr.msk.f32.gmra.mrb[6].mxu0 %vm335_vm0, %v306_v21  ;;  %v712_v62 = vcombine.high %v702_v56, %v702_v56  ;;  %v2890_v63 = vrot.slane %v779_v55, %v2874_v44  ;;  %v810_v1 = vcombine.high %v800_v58, %v800_v58 }
  0x25   : > { %2534 = vmatprep.mubr.msk.f32.mxu1 %vm335_vm0, %v323_v22  ;;  %2510 = vmatprep.mubr.msk.f32.mxu0 %vm335_vm0, %v307_v23  ;;  %v868_v3 = vrot.slane %v702_v56, %v2884_v57  ;;  %v932_v4 = vrot.slane %v800_v58, %v2884_v57  ;;  %v2895_v5 = vrot.slane %v681_v59, %v2874_v44 }
  0x26   : > { %v864_v8 = vrot.slane %v688_v60, %v2884_v57  ;;  %v928_v9 = vrot.slane %v786_v61, %v2884_v57  ;;  %v876_v11 = vrot.slane %v712_v62, %v2884_v57  ;;  %v811_v12 = vcombine.high %v2890_v63, %v2890_v63 }
  0x27   : > { %v872_v15 = vrot.slane %v710_v0, %v2884_v57  ;;  %v940_v16 = vrot.slane %v810_v1, %v2884_v57  ;;  %v936_v17 = vrot.slane %v808_v2, %v2884_v57  ;;  %v2920_v18 = vrot.slane %v2901_v7, %v2874_v44 }
  0x28   : > { %2535 = vmatmul.mubr.msk.f32.gmra.mrb[8].mxu1 %vm335_vm0, %v324_v24  ;;  %2511 = vmatmul.mubr.msk.f32.gmra.mrb[8].mxu0 %vm335_vm0, %v308_v25  ;;  %v884_v23 = vrot.slane %v2895_v5, %v2884_v57  ;;  %v880_v24 = vrot.slane %v2898_v6, %v2884_v57  ;;  %v713_v38 = vcombine.high %v2895_v5, %v2895_v5 }
  0x29   : > { %2537 = vmatprep.mubr.msk.f32.mxu1 %vm335_vm0, %v325_v26  ;;  %2513 = vmatprep.mubr.msk.f32.mxu0 %vm335_vm0, %v309_v27  ;;  %v948_v27 = vrot.slane %v2890_v63, %v2884_v57  ;;  %v827_v39 = vcombine.high %v2920_v18, %v2920_v18  ;;  %v711_v50 = vcombine.high %v2898_v6, %v2898_v6 }
  0x2b   : > { %v2966_v59 = vrot.slane %v827_v39, %v2874_v44 }
  0x2c   : > { %2538 = vmatmul.mubr.msk.f32.gmra.mrb[10].mxu1 %vm335_vm0, %v326_v28  ;;  %2514 = vmatmul.mubr.msk.f32.gmra.mrb[10].mxu0 %vm335_vm0, %v310_v29  ;;  %v944_v28 = vrot.slane %v2906_v10, %v2884_v57  ;;  %v658_v29 = vld [vmem:[%s2871_s16 + $0x8] sm:$0xff] }
  0x2d   : > { %2516 = vmatprep.mubr.msk.f32.mxu0 %vm335_vm0, %v311_v30  ;;  %2540 = vmatprep.mubr.msk.f32.mxu1 %vm335_vm0, %v327_v31  ;;  %v721_v47 = vrot.slane %v658_v29, %v2874_v44  ;;  %v714_v53 = vcombine.high %v658_v29, %v658_v29 }
  0x2f   : > { %v2975_v0 = vrot.slane %v721_v47, %v2874_v44  ;;  %v2980_v6 = vrot.slane %v714_v53, %v2874_v44 }
  0x30   : > { %2517 = vmatmul.mubr.msk.f32.gmra.mrb[12].mxu0 %vm335_vm0, %v312_v32  ;;  %2541 = vmatmul.mubr.msk.f32.gmra.mrb[12].mxu1 %vm335_vm0, %v328_v33  ;;  %v956_v32 = vrot.slane %v811_v12, %v2884_v57  ;;  %v809_v33 = vcombine.high %v2906_v10, %v2906_v10 }
  0x31   : > { %2519 = vmatprep.mubr.msk.f32.mxu0 %vm335_vm0, %v313_v34  ;;  %2543 = vmatprep.mubr.msk.f32.mxu1 %vm335_vm0, %v329_v35  ;;  %v730_v29 = vcombine.high %v2980_v6, %v2980_v6 }
  0x34   : > { %2520 = vmatmul.mubr.msk.f32.gmra.mrb[14].mxu0 %vm335_vm0, %v314_v36  ;;  %2544 = vmatmul.mubr.msk.f32.gmra.mrb[14].mxu1 %vm335_vm0, %v330_v37 }
  0xeb   : > { %v2911_v13 = vpop.f32.mrb[0].mxu0  ;;  %v2913_v14 = vpop.f32.mrb[0].mxu1 }
  0xec   : > { %v1022_v19 = vadd.f32 %v2911_v13, %v868_v3  ;;  %v1038_v20 = vadd.f32 %v2913_v14, %v932_v4  ;;  %v2924_v21 = vpop.f32.mrb[1].mxu0  ;;  %v2926_v22 = vpop.f32.mrb[1].mxu1  ;;  %v729_v3 = vcombine.high %v721_v47, %v721_v47 }
  0xed   : > { %v1021_v25 = vadd.f32 %v864_v8, %v2924_v21  ;;  %v1037_v26 = vadd.f32 %v928_v9, %v2926_v22 }
  0xee   : > { %v2415_v30 = vmul.f32 -1.442695, %v1022_v19  ;;  %v2431_v31 = vmul.f32 -1.442695, %v1038_v20  ;;  %v2998_v20 = vrot.slane %v711_v50, %v2884_v57  ;;  %v759_v50 = vcombine.high %v2975_v0, %v2975_v0 }
  0xef   : > { %v2414_v34 = vmul.f32 -1.442695, %v1021_v25  ;;  %v2430_v35 = vmul.f32 -1.442695, %v1037_v26  ;;  %v2942_v36 = vpop.f32.mrb[2].mxu0  ;;  %v2944_v37 = vpop.f32.mrb[2].mxu1  ;;  %v896_v25 = vrot.slane %v2975_v0, %v2884_v57 }
  0xf0   : > { %2577 = vpow2.f32 %v2415_v30  ;;  %v1024_v40 = vadd.f32 %v2942_v36, %v876_v11  ;;  %v2951_v42 = vpop.f32.mrb[3].mxu0  ;;  %v1040_v45 = vadd.f32 %v2944_v37, %v940_v16  ;;  %v2954_v46 = vpop.f32.mrb[3].mxu1  ;;  %v2985_v11 = vrot.slane %v809_v33, %v2884_v57 }
  0xf1   : > { %2579 = vpow2.f32 %v2431_v31  ;;  %v1023_v48 = vadd.f32 %v872_v15, %v2951_v42  ;;  %v1039_v49 = vadd.f32 %v936_v17, %v2954_v46  ;;  %v2993_v17 = vrot.slane %v713_v38, %v2884_v57 }
  0xf2   : > { %2581 = vpow2.f32 %v2414_v34  ;;  %v2417_v51 = vmul.f32 -1.442695, %v1024_v40  ;;  %v2433_v52 = vmul.f32 -1.442695, %v1040_v45  ;;  %v859_v33 = vcombine.high %v2966_v59, %v2966_v59 }
  0xf3   : > { %2583 = vpow2.f32 %v2430_v35  ;;  %v2416_v54 = vmul.f32 -1.442695, %v1023_v48  ;;  %v2432_v55 = vmul.f32 -1.442695, %v1039_v49  ;;  %v2961_v56 = vpop.f32.mrb[4].mxu0  ;;  %v2963_v58 = vpop.f32.mrb[4].mxu1  ;;  %v812_v34 = vcombine.high %v2901_v7, %v2901_v7 }
  0xf4   : > { %2585 = vpow2.f32 %v2417_v51  ;;  %v1026_v60 = vadd.f32 %v2961_v56, %v884_v23  ;;  %v2969_v61 = vpop.f32.mrb[5].mxu0  ;;  %v1042_v62 = vadd.f32 %v2963_v58, %v948_v27  ;;  %v2972_v63 = vpop.f32.mrb[5].mxu1  ;;  %v964_v23 = vrot.slane %v2966_v59, %v2884_v57 }
  0xf5   : > { %2587 = vpow2.f32 %v2416_v54  ;;  %v1025_v1 = vadd.f32 %v880_v24, %v2969_v61  ;;  %v1041_v2 = vadd.f32 %v944_v28, %v2972_v63  ;;  %v3003_v24 = vrot.slane %v729_v3, %v2874_v44 }
  0xf6   : > { %2589 = vpow2.f32 %v2433_v52  ;;  %v2419_v4 = vmul.f32 -1.442695, %v1026_v60  ;;  %v2435_v5 = vmul.f32 -1.442695, %v1042_v62  ;;  %v3009_v28 = vrot.slane %v2920_v18, %v2874_v44 }
  0xf7   : > { %2591 = vpow2.f32 %v2432_v55  ;;  %v2418_v8 = vmul.f32 -1.442695, %v1025_v1  ;;  %v2434_v9 = vmul.f32 -1.442695, %v1041_v2  ;;  %v2982_v10 = vpop.f32.mrb[6].mxu1  ;;  %v2987_v12 = vpop.f32.mrb[6].mxu0  ;;  %v761_v45 = vcombine.high %v3003_v24, %v3003_v24 }
  0xf8   : > { %2593 = vpow2.f32 %v2419_v4  ;;  %v1044_v15 = vadd.f32 %v2982_v10, %v956_v32  ;;  %v2990_v16 = vpop.f32.mrb[7].mxu1  ;;  %v2995_v19 = vpop.f32.mrb[7].mxu0  ;;  %v857_v40 = vcombine.high %v3009_v28, %v3009_v28  ;;  %v900_v49 = vrot.slane %v3003_v24, %v2884_v57 }
  0xf9   : > { %2595 = vpow2.f32 %v2418_v8  ;;  %v960_v53 = vrot.slane %v3009_v28, %v2884_v57  ;;  %v3036_v54 = vrot.slane %v730_v29, %v2874_v44  ;;  %v972_v1 = vrot.slane %v859_v33, %v2884_v57 }
  0xfa   : > { %v2578_v26 = vpop.eup %2577  ;;  %2597 = vpow2.f32 %v2435_v5  ;;  %v2437_v27 = vmul.f32 -1.442695, %v1044_v15  ;;  %v3042_v2 = vrot.slane %v812_v34, %v2874_v44  ;;  %v968_v8 = vrot.slane %v857_v40, %v2884_v57 }
  0xfb   : > { %v2580_v30 = vpop.eup %2579  ;;  %v1150_v31 = vadd.f32 1.0, %v2578_v26  ;;  %2599 = vpow2.f32 %v2434_v9  ;;  %v3013_v32 = vpop.f32.mrb[8].mxu1  ;;  %v3050_v15 = vrot.slane %v761_v45, %v2884_v57  ;;  %v3055_v28 = vrot.slane %v759_v50, %v2884_v57 }
  0xfc   : > { %v2582_v35 = vpop.eup %2581  ;;  %v1166_v38 = vadd.f32 1.0, %v2580_v30  ;;  %2601 = vpow2.f32 %v2437_v27  ;;  %v3019_v39 = vpop.f32.mrb[8].mxu0  ;;  %v3059_v29 = vrot.slane %v2980_v6, %v2874_v44  ;;  %v1043_v33 = vadd.f32 %v2985_v11, %v2990_v16 }
  0xfd   : > { %v3021_v18 = vpop.f32.mrb[9].mxu1  ;;  %v2584_v47 = vpop.eup %2583  ;;  %2603 = vrcp.f32 %v1150_v31  ;;  %v1149_v48 = vadd.f32 1.0, %v2582_v35  ;;  %v1028_v40 = vadd.f32 %v2987_v12, %v2993_v17  ;;  %v1027_v11 = vadd.f32 %v2998_v20, %v2995_v19 }
  0xfe   : > { %3589 = vst [vmem:[#allocation2_spill] sm:$0xff] %v3021_v18  ;;  %v3029_v7 = vpop.f32.mrb[9].mxu0  ;;  %v2586_v51 = vpop.eup %2585  ;;  %2605 = vrcp.f32 %v1166_v38  ;;  %v1165_v52 = vadd.f32 1.0, %v2584_v47  ;;  %v1046_v50 = vadd.f32 %v3013_v32, %v964_v23  ;;  %v912_v20 = vrot.slane %v3059_v29, %v2884_v57 }
  0xff   : > { %v2588_v55 = vpop.eup %2587  ;;  %2607 = vrcp.f32 %v1149_v48  ;;  %v1152_v60 = vadd.f32 1.0, %v2586_v51  ;;  %v3038_v62 = vpop.f32.mrb[10].mxu1  ;;  %v2420_v41 = vmul.f32 -1.442695, %v1027_v11 }
 0x100   : > { %3590 = vst [vmem:[#allocation3_spill] sm:$0xff] %v3038_v62  ;;  %v2590_v3 = vpop.eup %2589  ;;  %2609 = vrcp.f32 %v1165_v52  ;;  %v1151_v4 = vadd.f32 1.0, %v2588_v55  ;;  %v3044_v5 = vpop.f32.mrb[11].mxu1  ;;  %v2439_v6 = vmul.f32 -1.442695, %v1046_v50  ;;  %v1048_v0 = vadd.f32 %v3038_v62, %v972_v1 }
 0x101   : > { %v3047_v9 = vpop.f32.mrb[10].mxu0  ;;  %v2592_v24 = vpop.eup %2591  ;;  %2611 = vrcp.f32 %v1152_v60  ;;  %v1168_v26 = vadd.f32 1.0, %v2590_v3  ;;  %v3084_v60 = vld [vmem:[%s3576_s4] ss:$0 sm:$0xff]  ;;  %v1030_v3 = vadd.f32 %v3019_v39, %v900_v49  ;;  %v1029_v49 = vadd.f32 %v896_v25, %v3029_v7 }
 0x102   : > { %v3052_v27 = vpop.f32.mrb[11].mxu0  ;;  %v2594_v30 = vpop.eup %2593  ;;  %2613 = vrcp.f32 %v1151_v4  ;;  %v1167_v31 = vadd.f32 1.0, %v2592_v24  ;;  %v2436_v24 = vmul.f32 -1.442695, %v1043_v33 }
 0x103   : > { %v2596_v35 = vpop.eup %2595  ;;  %2615 = vrcp.f32 %v1168_v26  ;;  %v1154_v38 = vadd.f32 1.0, %v2594_v30  ;;  %v3067_v45 = vpop.f32.mrb[12].mxu0  ;;  %v1045_v26 = vadd.f32 %v960_v53, %v3021_v18 }
 0x104   : > { %3591 = vst [vmem:[#allocation4_spill] sm:$0xff] %v3067_v45  ;;  %v2598_v47 = vpop.eup %2597  ;;  %2617 = vrcp.f32 %v1167_v31  ;;  %v1153_v48 = vadd.f32 1.0, %v2596_v35  ;;  %v3077_v51 = vpop.f32.mrb[13].mxu0  ;;  %v2421_v35 = vmul.f32 -1.442695, %v1028_v40 }
 0x105   : > { %v3079_v52 = vpop.f32.mrb[12].mxu1  ;;  %v2600_v17 = vpop.eup %2599  ;;  %2619 = vrcp.f32 %v1154_v38  ;;  %v1170_v55 = vadd.f32 1.0, %v2598_v47  ;;  %v2423_v40 = vmul.f32 -1.442695, %v1030_v3  ;;  %v2438_v50 = vmul.f32 -1.442695, %v1045_v26 }
 0x106   : > { %3592 = vst [vmem:[#allocation5_spill] sm:$0xff] %v3079_v52  ;;  %v3089_v59 = vpop.f32.mrb[13].mxu1  ;;  %v2602_v23 = vpop.eup %2601  ;;  %2621 = vrcp.f32 %v1153_v48  ;;  %v1169_v4 = vadd.f32 1.0, %v2600_v17  ;;  %v1032_v3 = vadd.f32 %v3047_v9, %v3050_v15  ;;  %v1031_v26 = vadd.f32 %v3055_v28, %v3052_v27 }
 0x107   : > { %3593 = vst [vmem:[#allocation6_spill] sm:$0xff] %v3089_v59  ;;  %v2604_v30 = vpop.eup %2603  ;;  %2623 = vrcp.f32 %v1170_v55  ;;  %v1172_v31 = vadd.f32 1.0, %v2602_v23  ;;  %v3096_v38 = vpop.f32.mrb[14].mxu0 }
 0x108   : > { %3594 = vst [vmem:[#allocation7_spill] sm:$0xff] %v3096_v38  ;;  %v2606_v47 = vpop.eup %2605  ;;  %2625 = vrcp.f32 %v1169_v4  ;;  %v1253_v48 = vmul.f32 %v2604_v30, %v3084_v60  ;;  %v3099_v33 = vpop.f32.mrb[15].mxu0  ;;  %v1047_v4 = vadd.f32 %v968_v8, %v3044_v5  ;;  %v2424_v18 = vmul.f32 -1.442695, %v1031_v26 }
 0x109   : > { %3595 = vst [vmem:[#allocation8_spill] sm:$0xff] %v3099_v33  ;;  %v3101_v53 = vpop.f32.mrb[14].mxu1  ;;  %v2608_v17 = vpop.eup %2607  ;;  %2627 = vrcp.f32 %v1172_v31  ;;  %v1269_v55 = vmul.f32 %v2606_v47, %v3084_v60  ;;  %v2422_v31 = vmul.f32 -1.442695, %v1029_v49  ;;  %v3598_v49 = vrot.slane %v3036_v54, %v2884_v57 }
 0x10a   : > { %3596 = vst [vmem:[#allocation9_spill] sm:$0xff] %v3101_v53  ;;  %v3105_v25 = vpop.f32.mrb[15].mxu1  ;;  %v2610_v23 = vpop.eup %2609  ;;  %2629 = vpow2.f32 %v2436_v24  ;;  %v1287_v11 = vsel %vm335_vm0, %v1253_v48, 0.0 }
 0x10b   : > { %3597 = vst [vmem:[#allocation10_spill] sm:$0xff] %v3105_v25  ;;  %v2612_v30 = vpop.eup %2611  ;;  %2631 = vpow2.f32 %v2421_v35  ;;  %1288 = vadd.xlane.f32.xlu0 %v1287_v11  ;;  %v1268_v34 = vmul.f32 %v2610_v23, %v3084_v60  ;;  %v1335_v1 = vsel %vm335_vm0, %v1269_v55, 0.0  ;;  %v2441_v35 = vmul.f32 -1.442695, %v1048_v0 }
 0x10c   : > { %v2614_v47 = vpop.eup %2613  ;;  %2633 = vpow2.f32 %v2420_v41  ;;  %v1255_v24 = vmul.f32 %v2612_v30, %v3084_v60  ;;  %v1034_v23 = vadd.f32 %v3067_v45, %v3598_v49  ;;  %v1252_v41 = vmul.f32 %v2608_v17, %v3084_v60 }
 0x10d   : > { %v2616_v48 = vpop.eup %2615  ;;  %2635 = vpow2.f32 %v2439_v6  ;;  %v1332_v8 = vsel %vm335_vm0, %v1268_v34, 0.0  ;;  %v2440_v55 = vmul.f32 -1.442695, %v1047_v4  ;;  %v1033_v11 = vadd.f32 %v912_v20, %v3077_v51 }
 0x10e   : > { %v2618_v15 = vpop.eup %2617  ;;  %2637 = vpow2.f32 %v2423_v40  ;;  %1333 = vadd.xlane.f32.xlu1 %v1332_v8  ;;  %v1293_v28 = vsel %vm335_vm0, %v1255_v24, 0.0  ;;  %v1254_v34 = vmul.f32 %v2614_v47, %v3084_v60  ;;  %v2425_v6 = vmul.f32 -1.442695, %v1032_v3 }
 0x10f   : > { %v2620_v30 = vpop.eup %2619  ;;  %2639 = vpow2.f32 %v2422_v31  ;;  %1336 = vadd.xlane.f32.xlu0 %v1335_v1  ;;  %v1271_v49 = vmul.f32 %v2616_v48, %v3084_v60  ;;  %v3599_v17 = vcombine.high %v3042_v2, %v3042_v2  ;;  %v2427_v4 = vmul.f32 -1.442695, %v1034_v23 }
 0x110   : > { %v2622_v0 = vpop.eup %2621  ;;  %2641 = vpow2.f32 %v2438_v50  ;;  %v3134_v31 = vrot.slane %v3042_v2, %v2874_v44  ;;  %v1284_v50 = vsel %vm335_vm0, %v1252_v41, 0.0  ;;  %v2426_v3 = vmul.f32 -1.442695, %v1033_v11 }
 0x111   : > { %v3130_v40 = vrot.slane %v3599_v17, %v2874_v44  ;;  %v2624_v20 = vpop.eup %2623  ;;  %2643 = vpow2.f32 %v2441_v35  ;;  %v1290_v24 = vsel %vm335_vm0, %v1254_v34, 0.0  ;;  %v1270_v26 = vmul.f32 %v2618_v15, %v3084_v60 }
 0x112   : > { %v3136_v47 = vpop.eup %2625  ;;  %1294 = vadd.xlane.f32.xlu1 %v1293_v28  ;;  %2645 = vpow2.f32 %v2440_v55  ;;  %v1341_v8 = vsel %vm335_vm0, %v1271_v49, 0.0  ;;  %v1257_v44 = vmul.f32 %v2620_v30, %v3084_v60  ;;  %v976_v41 = vrot.slane %v3134_v31, %v2884_v57 }
 0x113   : > { %v2628_v1 = vpop.eup %2627  ;;  %1285 = vadd.xlane.f32.xlu0 %v1284_v50  ;;  %2647 = vpow2.f32 %v2425_v6  ;;  %v980_v2 = vrot.slane %v3130_v40, %v2884_v57  ;;  %v762_v55 = vcombine.high %v3036_v54, %v3036_v54  ;;  %v860_v30 = vcombine.high %v3130_v40, %v3130_v40 }
 0x114   : > { %v2630_v48 = vpop.eup %2629  ;;  %2649 = vpow2.f32 %v2424_v18  ;;  %v760_v18 = vcombine.high %v3059_v29, %v3059_v29  ;;  %v1338_v6 = vsel %vm335_vm0, %v1270_v26, 0.0  ;;  %v1256_v49 = vmul.f32 %v2622_v0, %v3084_v60 }
 0x115   : > { %v2632_v35 = vpop.eup %2631  ;;  %v1171_v23 = vadd.f32 1.0, %v2630_v48  ;;  %2651 = vpow2.f32 %v2427_v4  ;;  %v1299_v4 = vsel %vm335_vm0, %v1257_v44, 0.0  ;;  %v1273_v50 = vmul.f32 %v2624_v20, %v3084_v60 }
 0x116   : > { %v2634_v11 = vpop.eup %2633  ;;  %v1156_v15 = vadd.f32 1.0, %v2632_v35  ;;  %1291 = vadd.xlane.f32.xlu1 %v1290_v24  ;;  %2653 = vpow2.f32 %v2426_v3  ;;  %v924_v40 = vrot.slane %v762_v55, %v2884_v57  ;;  %v858_v24 = vcombine.high %v3134_v31, %v3134_v31 }
 0x117   : > { %v2636_v28 = vpop.eup %2635  ;;  %2655 = vrcp.f32 %v1171_v23  ;;  %v1155_v34 = vadd.f32 1.0, %v2634_v11  ;;  %1342 = vadd.xlane.f32.xlu0 %v1341_v8  ;;  %v920_v0 = vrot.slane %v760_v18, %v2884_v57  ;;  %v988_v8 = vrot.slane %v860_v30, %v2884_v57 }
 0x118   : > { %v2638_v17 = vpop.eup %2637  ;;  %2657 = vrcp.f32 %v1156_v15  ;;  %v1174_v54 = vadd.f32 1.0, %v2636_v28  ;;  %v1296_v20 = vsel %vm335_vm0, %v1256_v49, 0.0  ;;  %v1275_v23 = vmul.f32 %v2628_v1, %v3084_v60 }
 0x119   : > { %v2640_v3 = vpop.eup %2639  ;;  %2659 = vrcp.f32 %v1155_v34  ;;  %v1158_v29 = vadd.f32 1.0, %v2638_v17  ;;  %v1050_v31 = vadd.f32 %v3079_v52, %v980_v2  ;;  %v1347_v15 = vsel %vm335_vm0, %v1273_v50, 0.0 }
 0x11a   : > { %v2642_v48 = vpop.eup %2641  ;;  %2661 = vrcp.f32 %v1174_v54  ;;  %v1157_v26 = vadd.f32 1.0, %v2640_v3  ;;  %1339 = vadd.xlane.f32.xlu1 %v1338_v6  ;;  %v1049_v18 = vadd.f32 %v976_v41, %v3089_v59  ;;  %v984_v30 = vrot.slane %v858_v24, %v2884_v57 }
 0x11b   : > { %v2644_v35 = vpop.eup %2643  ;;  %2663 = vrcp.f32 %v1158_v29  ;;  %v1173_v44 = vadd.f32 1.0, %v2642_v48  ;;  %1300 = vadd.xlane.f32.xlu0 %v1299_v4  ;;  %v1036_v49 = vadd.f32 %v3096_v38, %v924_v40  ;;  %v1272_v1 = vmul.f32 %v3136_v47, %v3084_v60 }
 0x11c   : > { %v2646_v55 = vpop.eup %2645  ;;  %2665 = vrcp.f32 %v1157_v26  ;;  %v1176_v11 = vadd.f32 1.0, %v2644_v35  ;;  %v1353_v4 = vsel %vm335_vm0, %v1275_v23, 0.0  ;;  %v1035_v50 = vadd.f32 %v920_v0, %v3099_v33 }
 0x11d   : > { %v2648_v28 = vpop.eup %2647  ;;  %v1175_v34 = vadd.f32 1.0, %v2646_v55  ;;  %v2443_v29 = vmul.f32 -1.442695, %v1050_v31  ;;  %v1052_v24 = vadd.f32 %v3101_v53, %v988_v8  ;;  %v2442_v40 = vmul.f32 -1.442695, %v1049_v18 }
 0x11e   : > { %v2650_v6 = vpop.eup %2649  ;;  %2667 = vrcp.f32 %v1176_v11  ;;  %v1160_v17 = vadd.f32 1.0, %v2648_v28  ;;  %1297 = vadd.xlane.f32.xlu1 %v1296_v20  ;;  %v1051_v26 = vadd.f32 %v984_v30, %v3105_v25  ;;  %v2429_v35 = vmul.f32 -1.442695, %v1036_v49 }
 0x11f   : > { %v2652_v54 = vpop.eup %2651  ;;  %2669 = vrcp.f32 %v1173_v44  ;;  %v1159_v2 = vadd.f32 1.0, %v2650_v6  ;;  %1348 = vadd.xlane.f32.xlu0 %v1347_v15  ;;  %v1344_v44 = vsel %vm335_vm0, %v1272_v1, 0.0  ;;  %v2428_v23 = vmul.f32 -1.442695, %v1035_v50 }
 0x120   : > { %v2654_v41 = vpop.eup %2653  ;;  %2671 = vrcp.f32 %v1175_v34  ;;  %v1162_v3 = vadd.f32 1.0, %v2652_v54  ;;  %v2445_v11 = vmul.f32 -1.442695, %v1052_v24  ;;  %v2444_v28 = vmul.f32 -1.442695, %v1051_v26 }
 0x121   : > { %v2656_v48 = vpop.eup %2655  ;;  %2673 = vrcp.f32 %v1160_v17  ;;  %v1161_v6 = vadd.f32 1.0, %v2654_v41 }
 0x122   : > { %v2658_v47 = vpop.eup %2657  ;;  %2675 = vrcp.f32 %v1159_v2  ;;  %1354 = vadd.xlane.f32.xlu1 %v1353_v4  ;;  %v1274_v20 = vmul.f32 %v2656_v48, %v3084_v60 }
 0x123   : > { %v2660_v0 = vpop.eup %2659  ;;  %2677 = vrcp.f32 %v1162_v3  ;;  %1345 = vadd.xlane.f32.xlu0 %v1344_v44  ;;  %v1259_v55 = vmul.f32 %v2658_v47, %v3084_v60 }
 0x124   : > { %v2662_v8 = vpop.eup %2661  ;;  %2679 = vpow2.f32 %v2443_v29  ;;  %v1350_v31 = vsel %vm335_vm0, %v1274_v20, 0.0  ;;  %v1258_v17 = vmul.f32 %v2660_v0, %v3084_v60 }
 0x125   : > { %v2664_v15 = vpop.eup %2663  ;;  %2681 = vpow2.f32 %v2442_v40  ;;  %v1305_v34 = vsel %vm335_vm0, %v1259_v55, 0.0  ;;  %v1277_v18 = vmul.f32 %v2662_v8, %v3084_v60 }
 0x126   : > { %v2666_v30 = vpop.eup %2665  ;;  %2683 = vpow2.f32 %v2429_v35  ;;  %1351 = vadd.xlane.f32.xlu1 %v1350_v31  ;;  %v1261_v2 = vmul.f32 %v2664_v15, %v3084_v60  ;;  %v1302_v41 = vsel %vm335_vm0, %v1258_v17, 0.0 }
 0x127   : > { %2685 = vpow2.f32 %v2428_v23  ;;  %1306 = vadd.xlane.f32.xlu0 %v1305_v34  ;;  %v1359_v49 = vsel %vm335_vm0, %v1277_v18, 0.0  ;;  %v1260_v1 = vmul.f32 %v2666_v30, %v3084_v60 }
 0x128   : > { %v2668_v54 = vpop.eup %2667  ;;  %2687 = vpow2.f32 %v2445_v11  ;;  %v1311_v40 = vsel %vm335_vm0, %v1261_v2, 0.0 }
 0x129   : > { %v2670_v4 = vpop.eup %2669  ;;  %2689 = vpow2.f32 %v2444_v28  ;;  %v1308_v29 = vsel %vm335_vm0, %v1260_v1, 0.0  ;;  %v1279_v24 = vmul.f32 %v2668_v54, %v3084_v60 }
 0x12a   : > { %v2672_v50 = vpop.eup %2671  ;;  %2691 = vrcp.f32 %v1161_v6  ;;  %1360 = vadd.xlane.f32.xlu1 %v1359_v49  ;;  %v1276_v35 = vmul.f32 %v2670_v4, %v3084_v60 }
 0x12b   : > { %v2674_v3 = vpop.eup %2673  ;;  %1303 = vadd.xlane.f32.xlu0 %v1302_v41  ;;  %v1365_v0 = vsel %vm335_vm0, %v1279_v24, 0.0  ;;  %v1278_v23 = vmul.f32 %v2672_v50, %v3084_v60 }
 0x12c   : > { %v2676_v48 = vpop.eup %2675  ;;  %v1263_v11 = vmul.f32 %v2674_v3, %v3084_v60  ;;  %v1356_v34 = vsel %vm335_vm0, %v1276_v35, 0.0 }
 0x12d   : > { %v2678_v26 = vpop.eup %2677  ;;  %v1362_v6 = vsel %vm335_vm0, %v1278_v23, 0.0  ;;  %v1262_v4 = vmul.f32 %v2676_v48, %v3084_v60 }
 0x12e   : > { %v2680_v47 = vpop.eup %2679  ;;  %1309 = vadd.xlane.f32.xlu1 %v1308_v29  ;;  %v1265_v17 = vmul.f32 %v2678_v26, %v3084_v60  ;;  %v1317_v2 = vsel %vm335_vm0, %v1263_v11, 0.0 }
 0x12f   : > { %v2682_v44 = vpop.eup %2681  ;;  %v1178_v20 = vadd.f32 1.0, %v2680_v47  ;;  %1312 = vadd.xlane.f32.xlu0 %v1311_v40  ;;  %v1314_v3 = vsel %vm335_vm0, %v1262_v4, 0.0 }
 0x130   : > { %v2684_v55 = vpop.eup %2683  ;;  %v1177_v8 = vadd.f32 1.0, %v2682_v44  ;;  %v1323_v50 = vsel %vm335_vm0, %v1265_v17, 0.0  ;;  %v1384_v17 = vld [vmem:[%s285_s22 + $0x10] sm:$0xff] }
 0x131   : > { %v2686_v31 = vpop.eup %2685  ;;  %2693 = vrcp.f32 %v1178_v20  ;;  %v1164_v15 = vadd.f32 1.0, %v2684_v55 }
 0x132   : > { %v2688_v28 = vpop.eup %2687  ;;  %2695 = vrcp.f32 %v1177_v8  ;;  %1366 = vadd.xlane.f32.xlu1 %v1365_v0  ;;  %v1163_v1 = vadd.f32 1.0, %v2686_v31 }
 0x133   : > { %v2690_v18 = vpop.eup %2689  ;;  %2697 = vrcp.f32 %v1164_v15  ;;  %v1180_v30 = vadd.f32 1.0, %v2688_v28  ;;  %1357 = vadd.xlane.f32.xlu0 %v1356_v34 }
 0x134   : > { %v2692_v49 = vpop.eup %2691  ;;  %v1179_v54 = vadd.f32 1.0, %v2690_v18 }
 0x135   : > { %2699 = vrcp.f32 %v1180_v30  ;;  %v1264_v41 = vmul.f32 %v2692_v49, %v3084_v60  ;;  %v1383_v30 = vld [vmem:[%s285_s22 + $0x8] sm:$0xff]  ;;  %v1385_v49 = vld [vmem:[%s285_s22 + $0x18] sm:$0xff] }
 0x136   : > { %2701 = vrcp.f32 %v1179_v54  ;;  %1363 = vadd.xlane.f32.xlu1 %v1362_v6  ;;  %v1382_v6 = vld [vmem:[%s285_s22] sm:$0xff] }
 0x137   : > { %1318 = vadd.xlane.f32.xlu0 %v1317_v2  ;;  %2703 = vrcp.f32 %v1163_v1  ;;  %v1320_v24 = vsel %vm335_vm0, %v1264_v41, 0.0 }
 0x13a   : > { %1324 = vadd.xlane.f32.xlu1 %v1323_v50 }
 0x13b   : > { %v2694_v29 = vpop.eup %2693  ;;  %1315 = vadd.xlane.f32.xlu0 %v1314_v3 }
 0x13c   : > { %v2696_v40 = vpop.eup %2695  ;;  %v1281_v26 = vmul.f32 %v2694_v29, %v3084_v60 }
 0x13d   : > { %v2698_v47 = vpop.eup %2697  ;;  %v1280_v35 = vmul.f32 %v2696_v40, %v3084_v60 }
 0x13e   : > { %1321 = vadd.xlane.f32.xlu1 %v1320_v24  ;;  %v1371_v48 = vsel %vm335_vm0, %v1281_v26, 0.0  ;;  %v1267_v44 = vmul.f32 %v2698_v47, %v3084_v60 }
 0x13f   : > { %v2700_v20 = vpop.eup %2699  ;;  %1372 = vadd.xlane.f32.xlu0 %v1371_v48  ;;  %v1368_v0 = vsel %vm335_vm0, %v1280_v35, 0.0 }
 0x140   : > { %v2702_v23 = vpop.eup %2701  ;;  %v1329_v55 = vsel %vm335_vm0, %v1267_v44, 0.0  ;;  %v1283_v8 = vmul.f32 %v2700_v20, %v3084_v60 }
 0x141   : > { %v1282_v11 = vmul.f32 %v2702_v23, %v3084_v60  ;;  %v2704_v31 = vpop.eup %2703 }
 0x142   : > { %1369 = vadd.xlane.f32.xlu1 %v1368_v0  ;;  %v1377_v15 = vsel %vm335_vm0, %v1283_v8, 0.0  ;;  %v1266_v34 = vmul.f32 %v2704_v31, %v3084_v60 }
 0x143   : > { %1330 = vadd.xlane.f32.xlu0 %v1329_v55  ;;  %v1374_v28 = vsel %vm335_vm0, %v1282_v11, 0.0  ;;  %v3600_v11 = vlaneseq }
 0x144   : > { %v1326_v18 = vsel %vm335_vm0, %v1266_v34, 0.0 }
 0x145   : > { %v3233_v31 = vand.u32 127, %v3600_v11 }
 0x146   : > { %1378 = vadd.xlane.f32.xlu1 %v1377_v15 }
 0x147   : > { %1375 = vadd.xlane.f32.xlu0 %v1374_v28  ;;  %v3237_v34 = vsub.s32 %v3233_v31, %v2865_v43 }
 0x14a   : > { %1327 = vadd.xlane.f32.xlu1 %v1326_v18 }
 0x15b   : > { %1390 = vperm.xlu1 %2572, %v1383_v30  }
 0x15d   : > { %1387 = vperm.xlu0 %2571, %v1382_v6  }
 0x15f   : > { %1393 = vperm.xlu1 %2572, %v1384_v17  }
 0x163   : > { %1396 = vperm.xlu1 %2572, %v1385_v49  }
 0x198   : > { %v1289_v1 = vpop.xlane.xlu0 %1288 }
 0x199   : > { %v1441_v17 = vrot.slane %v1289_v1, %v3237_v34 }
 0x19b   : > { %v1334_v54 = vpop.xlane.xlu1 %1333 }
 0x19c   : > { %v1337_v60 = vpop.xlane.xlu0 %1336  ;;  %v1501_v11 = vrot.slane %v1334_v54, %v3237_v34 }
 0x19d   : > { %v1505_v52 = vrot.slane %v1337_v60, %v3237_v34 }
 0x19f   : > { %v1295_v2 = vpop.xlane.xlu1 %1294  ;;  %v1583_v54 = vsel %vm1562_vm1, %v1505_v52, %v1501_v11 }
 0x1a0   : > { %v1286_v4 = vpop.xlane.xlu0 %1285 }
 0x1a1   : > { %v1437_v6 = vrot.slane %v1286_v4, %v3237_v34 }
 0x1a3   : > { %v1292_v50 = vpop.xlane.xlu1 %1291  ;;  %v1563_v4 = vsel %vm1562_vm1, %v1441_v17, %v1437_v6 }
 0x1a4   : > { %v1343_v41 = vpop.xlane.xlu0 %1342  ;;  %v1445_v59 = vrot.slane %v1292_v50, %v3237_v34 }
 0x1a6   : > { %v1565_v60 = vsel %vm1564_vm2, %v1445_v59, %v1563_v4 }
 0x1a7   : > { %v1340_v3 = vpop.xlane.xlu1 %1339 }
 0x1a8   : > { %v3218_v29 = vpop.xlane.xlu0 %1300  ;;  %v1509_v1 = vrot.slane %v1340_v3, %v3237_v34 }
 0x1aa   : > { %v1584_v45 = vsel %vm1564_vm2, %v1509_v1, %v1583_v54 }
 0x1ab   : > { %v1298_v24 = vpop.xlane.xlu1 %1297 }
 0x1ac   : > { %v3220_v40 = vpop.xlane.xlu0 %1348  ;;  %v1453_v50 = vrot.slane %v1298_v24, %v3237_v34 }
 0x1ad   : > { %v1521_v1 = vrot.slane %v3220_v40, %v3237_v34 }
 0x1af   : > { %v3222_v26 = vpop.xlane.xlu1 %1354 }
 0x1b0   : > { %v1346_v47 = vpop.xlane.xlu0 %1345 }
 0x1b1   : > { %v1517_v6 = vrot.slane %v1346_v47, %v3237_v34 }
 0x1b3   : > { %v3224_v35 = vpop.xlane.xlu1 %1351 }
 0x1b4   : > { %v3226_v48 = vpop.xlane.xlu0 %1306 }
 0x1b7   : > { %v1361_v44 = vpop.xlane.xlu1 %1360 }
 0x1b8   : > { %v3228_v20 = vpop.xlane.xlu0 %1303  ;;  %v1537_v47 = vrot.slane %v1361_v44, %v3237_v34  ;;  %v1525_v44 = vrot.slane %v3224_v35, %v3237_v34 }
 0x1bb   : > { %v1310_v0 = vpop.xlane.xlu1 %1309 }
 0x1bc   : > { %v1313_v23 = vpop.xlane.xlu0 %1312  ;;  %v1469_v49 = vrot.slane %v1310_v0, %v3237_v34  ;;  %v1449_v0 = vrot.slane %v1295_v2, %v3237_v34  ;;  %v1513_v2 = vrot.slane %v1343_v41, %v3237_v34  ;;  %v1461_v41 = vrot.slane %v3228_v20, %v3237_v34 }
 0x1bd   : > { %v1473_v25 = vrot.slane %v1313_v23, %v3237_v34 }
 0x1be   : > { %v1567_v59 = vsel %vm1566_vm3, %v1449_v0, %v1565_v60  ;;  %v1585_v11 = vsel %vm1566_vm3, %v1513_v2, %v1584_v45 }
 0x1bf   : > { %v3230_v55 = vpop.xlane.xlu1 %1366  ;;  %v1576_v23 = vsel %vm1562_vm1, %v1473_v25, %v1469_v49 }
 0x1c0   : > { %v1358_v8 = vpop.xlane.xlu0 %1357 }
 0x1c1   : > { %v1533_v25 = vrot.slane %v1358_v8, %v3237_v34  ;;  %v1457_v8 = vrot.slane %v3218_v29, %v3237_v34 }
 0x1c3   : > { %v1364_v15 = vpop.xlane.xlu1 %1363  ;;  %v1590_v0 = vsel %vm1562_vm1, %v1537_v47, %v1533_v25 }
 0x1c4   : > { %v1319_v28 = vpop.xlane.xlu0 %1318 }
 0x1c5   : > { %v1481_v3 = vrot.slane %v1319_v28, %v3237_v34  ;;  %v1541_v28 = vrot.slane %v1364_v15, %v3237_v34 }
 0x1c7   : > { %v1325_v18 = vpop.xlane.xlu1 %1324  ;;  %v1591_v60 = vsel %vm1564_vm2, %v1541_v28, %v1590_v0 }
 0x1c8   : > { %v1316_v30 = vpop.xlane.xlu0 %1315  ;;  %v1489_v4 = vrot.slane %v1325_v18, %v3237_v34 }
 0x1c9   : > { %v1477_v38 = vrot.slane %v1316_v30, %v3237_v34 }
 0x1cb   : > { %v1322_v53 = vpop.xlane.xlu1 %1321  ;;  %v1577_v30 = vsel %vm1564_vm2, %v1477_v38, %v1576_v23  ;;  %v1569_v38 = vsel %vm1568_vm4, %v1453_v50, %v1567_v59  ;;  %v1545_v23 = vrot.slane %v3230_v55, %v3237_v34 }
 0x1cc   : > { %v3247_v33 = vpop.xlane.xlu0 %1372  ;;  %v1485_v17 = vrot.slane %v1322_v53, %v3237_v34  ;;  %v1578_v24 = vsel %vm1566_vm3, %v1481_v3, %v1577_v30  ;;  %v1586_v53 = vsel %vm1568_vm4, %v1517_v6, %v1585_v11  ;;  %v1571_v29 = vsel %vm1570_vm5, %v1457_v8, %v1569_v38 }
 0x1cd   : > { %v1573_v54 = vsel %vm1572_vm6, %v1461_v41, %v1571_v29  ;;  %v1587_v40 = vsel %vm1570_vm5, %v1521_v1, %v1586_v53  ;;  %v1465_v6 = vrot.slane %v3226_v48, %v3237_v34  ;;  %v1529_v3 = vrot.slane %v3222_v26, %v3237_v34 }
 0x1ce   : > { %v1579_v45 = vsel %vm1568_vm4, %v1485_v17, %v1578_v24  ;;  %v1592_v17 = vsel %vm1566_vm3, %v1545_v23, %v1591_v60  ;;  %v1588_v59 = vsel %vm1572_vm6, %v1525_v44, %v1587_v40  ;;  %v1553_v38 = vrot.slane %v3247_v33, %v3237_v34 }
 0x1cf   : > { %v1370_v62 = vpop.xlane.xlu1 %1369  ;;  %v1580_v30 = vsel %vm1570_vm5, %v1489_v4, %v1579_v45  ;;  %v1589_v53 = vsel %vm1574_vm7, %v1529_v3, %v1588_v59 }
 0x1d0   : > { %v1331_v52 = vpop.xlane.xlu0 %1330  ;;  %v1549_v50 = vrot.slane %v1370_v62, %v3237_v34 }
 0x1d1   : > { %v1497_v35 = vrot.slane %v1331_v52, %v3237_v34  ;;  %v1575_v52 = vsel %vm1574_vm7, %v1465_v6, %v1573_v54 }
 0x1d2   : > { %v1593_v48 = vsel %vm1568_vm4, %v1549_v50, %v1592_v17 }
 0x1d3   : > { %v1379_v49 = vpop.xlane.xlu1 %1378  ;;  %v1594_v28 = vsel %vm1570_vm5, %v1553_v38, %v1593_v48 }
 0x1d4   : > { %v1376_v15 = vpop.xlane.xlu0 %1375  ;;  %v1561_v1 = vrot.slane %v1379_v49, %v3237_v34 }
 0x1d5   : > { %v1557_v24 = vrot.slane %v1376_v15, %v3237_v34 }
 0x1d7   : > { %v1328_v20 = vpop.xlane.xlu1 %1327  ;;  %v1595_v33 = vsel %vm1572_vm6, %v1557_v24, %v1594_v28 }
 0x1d8   : > { %v1493_v18 = vrot.slane %v1328_v20, %v3237_v34  ;;  %v1596_v44 = vsel %vm1574_vm7, %v1561_v1, %v1595_v33  ;;  %v1678_v33 = vsub.s32 2, %v2865_v43  ;;  %v1671_v1 = vsub.s32 1, %v2865_v43 }
 0x1da   : > { %v1581_v55 = vsel %vm1572_vm6, %v1493_v18, %v1580_v30 }
 0x1db   : > { %v1391_v2 = vpop.permute.xlu1 %1390  ;;  %v1582_v25 = vsel %vm1574_vm7, %v1497_v35, %v1581_v55 }
 0x1dc   : > { %vm1399_vm9 = vcmp.lt.s32.totalorder %v3233_v31, %v1391_v2  ;;  %v1388_v62 = vpop.permute.xlu0 %1387 }
 0x1dd   : > { %vm1398_vm10 = vcmp.lt.s32.totalorder %v3233_v31, %v1388_v62  ;;  %v1602_v26 = vsel %vm1399_vm9, %v1582_v25, -1e+30  ;;  %v2731_v25 = vmov 0.0  }
 0x1de   : > { %v1609_v11 = vsel %vm1605_vm8, %v1602_v26, -inf  ;;  %v1601_v47 = vsel %vm1398_vm10, %v1575_v52, -1e+30  ;;  %v2447_v17 = vsel %vm1398_vm10, 1.0, %v2731_v25  ;;  %v2448_v59 = vsel %vm1399_vm9, 1.0, %v2731_v25 }
 0x1df   : > { %1610 = vmax.xlane.f32.xlu0 %v1609_v11  ;;  %v1394_v41 = vpop.permute.xlu1 %1393  ;;  %v1606_v8 = vsel %vm1605_vm8, %v1601_v47, -inf }
 0x1e0   : > { %vm1400_vm11 = vcmp.lt.s32.totalorder %v3233_v31, %v1394_v41  ;;  %1607 = vmax.xlane.f32.xlu1 %v1606_v8 }
 0x1e1   : > { %v1603_v4 = vsel %vm1400_vm11, %v1589_v53, -1e+30  ;;  %v2449_v38 = vsel %vm1400_vm11, 1.0, %v2731_v25 }
 0x1e2   : > { %v1612_v45 = vsel %vm1605_vm8, %v1603_v4, -inf }
 0x1e3   : > { %v1397_v0 = vpop.permute.xlu1 %1396 }
 0x1e4   : > { %vm1401_vm12 = vcmp.lt.s32.totalorder %v3233_v31, %v1397_v0  ;;  %1613 = vmax.xlane.f32.xlu1 %v1612_v45  ;;  %v3340_v31 = vsub.s32 3, %v2865_v43 }
 0x1e5   : > { %v1604_v20 = vsel %vm1401_vm12, %v1596_v44, -1e+30  ;;  %v2450_v62 = vsel %vm1401_vm12, 1.0, %v2731_v25 }
 0x1e6   : > { %v1615_v29 = vsel %vm1605_vm8, %v1604_v20, -inf }
 0x1e8   : > { %1616 = vmax.xlane.f32.xlu1 %v1615_v29 }
 0x26c   : > { %v1611_v23 = vpop.xlane.xlu0 %1610 }
 0x26d   : > { %v1619_v15 = vsub.f32 %v1602_v26, %v1611_v23  ;;  %v1608_v18 = vpop.xlane.xlu1 %1607 }
 0x26e   : > { %v1618_v54 = vsub.f32 %v1601_v47, %v1608_v18 }
 0x26f   : > { %v1624_v40 = vmul.f32 1.442695, %v1619_v15 }
 0x270   : > { %v1622_v34 = vmul.f32 1.442695, %v1618_v54  ;;  %v3345_v54 = vsub.s32 4, %v2865_v43 }
 0x271   : > { %2705 = vpow2.f32 %v1624_v40  ;;  %v1614_v49 = vpop.xlane.xlu1 %1613 }
 0x272   : > { %2707 = vpow2.f32 %v1622_v34  ;;  %v1620_v60 = vsub.f32 %v1603_v4, %v1614_v49 }
 0x274   : > { %v1626_v50 = vmul.f32 1.442695, %v1620_v60 }
 0x275   : > { %v1617_v35 = vpop.xlane.xlu1 %1616 }
 0x276   : > { %2709 = vpow2.f32 %v1626_v50  ;;  %v1621_v30 = vsub.f32 %v1604_v20, %v1617_v35  ;;  %v1699_v35 = vsub.s32 5, %v2865_v43 }
 0x278   : > { %v1628_v6 = vmul.f32 1.442695, %v1621_v30  ;;  %v1706_v30 = vsub.s32 6, %v2865_v43 }
 0x27a   : > { %2711 = vpow2.f32 %v1628_v6 }
 0x27b   : > { %v2706_v55 = vpop.eup %2705 }
 0x27c   : > { %v2708_v3 = vpop.eup %2707  ;;  %v1639_v24 = vmul.f32 %v2706_v55, %v2448_v59 }
 0x27d   : > { %v1638_v52 = vmul.f32 %v2708_v3, %v2447_v17 }
 0x27e   : > { %v1645_v47 = vsel %vm1605_vm8, %v1639_v24, 0.0 }
 0x27f   : > { %v1642_v48 = vsel %vm1605_vm8, %v1638_v52, 0.0 }
 0x280   : > { %v2710_v26 = vpop.eup %2709  ;;  %1643 = vadd.xlane.f32.xlu1 %v1642_v48 }
 0x281   : > { %v1640_v11 = vmul.f32 %v2710_v26, %v2449_v38 }
 0x283   : > { %v1648_v8 = vsel %vm1605_vm8, %v1640_v11, 0.0 }
 0x284   : > { %v2712_v53 = vpop.eup %2711  ;;  %1646 = vadd.xlane.f32.xlu1 %v1645_v47  ;;  %1649 = vadd.xlane.f32.xlu0 %v1648_v8 }
 0x285   : > { %v1641_v2 = vmul.f32 %v2712_v53, %v2450_v62 }
 0x287   : > { %v1651_v28 = vsel %vm1605_vm8, %v1641_v2, 0.0 }
 0x288   : > { %1652 = vadd.xlane.f32.xlu1 %v1651_v28 }
 0x30d   : > { %v1644_v4 = vpop.xlane.xlu1 %1643 }
 0x30e   : > { %2713 = vrcp.f32 %v1644_v4 }
 0x311   : > { %v1650_v41 = vpop.xlane.xlu0 %1649  ;;  %v1647_v49 = vpop.xlane.xlu1 %1646 }
 0x312   : > { %2715 = vrcp.f32 %v1650_v41 }
 0x313   : > { %2717 = vrcp.f32 %v1647_v49 }
 0x315   : > { %v1653_v3 = vpop.xlane.xlu1 %1652 }
 0x316   : > { %2719 = vrcp.f32 %v1653_v3 }
 0x318   : > { %v2714_v45 = vpop.eup %2713 }
 0x319   : > { %v1655_v44 = vmul.f32 %v2714_v45, %v1638_v52  ;;  %v1713_v52 = vsub.s32 7, %v2865_v43 }
 0x31b   : > { %v1679_v20 = vrot.slane %v1655_v44, %v1678_v33  ;;  %v1672_v29 = vrot.slane %v1655_v44, %v1671_v1  ;;  %v1686_v15 = vrot.slane %v1655_v44, %v3340_v31  ;;  %v1665_v18 = vrot.slane %v1655_v44, %v2884_v57 }
 0x31c   : > { %v2716_v0 = vpop.eup %2715  ;;  %v1693_v34 = vrot.slane %v1655_v44, %v3345_v54  ;;  %v1700_v6 = vrot.slane %v1655_v44, %v1699_v35  ;;  %v1707_v55 = vrot.slane %v1655_v44, %v1706_v30  ;;  %v1714_v59 = vrot.slane %v1655_v44, %v1713_v52 }
 0x31d   : > { %1681 = vbcast.lane.b32.xlu1 %v1679_v20, 256  ;;  %1674 = vbcast.lane.b32.xlu0 %v1672_v29, 256  ;;  %v1659_v23 = vmul.f32 %v2716_v0, %v1640_v11  ;;  %v2718_v26 = vpop.eup %2717 }
 0x31e   : > { %v1657_v38 = vmul.f32 %v2718_v26, %v1639_v24 }
 0x31f   : > { %v1784_v40 = vrot.slane %v1659_v23, %v1671_v1  ;;  %v1791_v60 = vrot.slane %v1659_v23, %v1678_v33  ;;  %v1798_v50 = vrot.slane %v1659_v23, %v3340_v31  ;;  %v1777_v25 = vrot.slane %v1659_v23, %v2884_v57 }
 0x320   : > { %v1805_v17 = vrot.slane %v1659_v23, %v3345_v54  ;;  %v1819_v48 = vrot.slane %v1659_v23, %v1706_v30  ;;  %v1812_v11 = vrot.slane %v1659_v23, %v1699_v35  ;;  %v1826_v47 = vrot.slane %v1659_v23, %v1713_v52  ;;  %v2720_v62 = vpop.eup %2719 }
 0x321   : > { %1688 = vbcast.lane.b32.xlu1 %v1686_v15, 256  ;;  %1667 = vbcast.lane.b32.xlu0 %v1665_v18, 256  ;;  %v1735_v8 = vrot.slane %v1657_v38, %v1678_v33  ;;  %v1728_v53 = vrot.slane %v1657_v38, %v1671_v1  ;;  %v1661_v28 = vmul.f32 %v2720_v62, %v1641_v2 }
 0x322   : > { %v1742_v43 = vrot.slane %v1657_v38, %v3340_v31  ;;  %v1721_v4 = vrot.slane %v1657_v38, %v2884_v57  ;;  %v1756_v24 = vrot.slane %v1657_v38, %v1699_v35  ;;  %v1749_v44 = vrot.slane %v1657_v38, %v3345_v54 }
 0x323   : > { %v1847_v41 = vrot.slane %v1661_v28, %v1678_v33  ;;  %v1840_v45 = vrot.slane %v1661_v28, %v1671_v1  ;;  %v1854_v20 = vrot.slane %v1661_v28, %v3340_v31  ;;  %v1833_v29 = vrot.slane %v1661_v28, %v2884_v57  ;;  %v2451_v31 = vld [vmem:[%s3577_s5] ss:$0 sm:$0xff] }
 0x324   : > { %v1763_v2 = vrot.slane %v1657_v38, %v1706_v30  ;;  %v1770_v0 = vrot.slane %v1657_v38, %v1713_v52  ;;  %v1861_v33 = vrot.slane %v1661_v28, %v3345_v54  ;;  %v1868_v1 = vrot.slane %v1661_v28, %v1699_v35 }
 0x325   : > { %1786 = vbcast.lane.b32.xlu1 %v1784_v40, 256  ;;  %1695 = vbcast.lane.b32.xlu0 %v1693_v34, 256  ;;  %v1882_v23 = vrot.slane %v1661_v28, %v1713_v52  ;;  %v1875_v15 = vrot.slane %v1661_v28, %v1706_v30 }
 0x329   : > { %1793 = vbcast.lane.b32.xlu1 %v1791_v60, 256  ;;  %1800 = vbcast.lane.b32.xlu0 %v1798_v50, 256 }
 0x32d   : > { %1702 = vbcast.lane.b32.xlu1 %v1700_v6, 256  ;;  %1709 = vbcast.lane.b32.xlu0 %v1707_v55, 256 }
 0x331   : > { %1779 = vbcast.lane.b32.xlu1 %v1777_v25, 256  ;;  %1807 = vbcast.lane.b32.xlu0 %v1805_v17, 256 }
 0x335   : > { %1716 = vbcast.lane.b32.xlu1 %v1714_v59, 256  ;;  %1821 = vbcast.lane.b32.xlu0 %v1819_v48, 256 }
 0x339   : > { %1814 = vbcast.lane.b32.xlu1 %v1812_v11, 256  ;;  %1828 = vbcast.lane.b32.xlu0 %v1826_v47, 256 }
 0x33d   : > { %1737 = vbcast.lane.b32.xlu0 %v1735_v8, 256  ;;  %1730 = vbcast.lane.b32.xlu1 %v1728_v53, 256 }
 0x341   : > { %1744 = vbcast.lane.b32.xlu0 %v1742_v43, 256  ;;  %1723 = vbcast.lane.b32.xlu1 %v1721_v4, 256 }
 0x345   : > { %1849 = vbcast.lane.b32.xlu1 %v1847_v41, 256  ;;  %1842 = vbcast.lane.b32.xlu0 %v1840_v45, 256 }
 0x349   : > { %1758 = vbcast.lane.b32.xlu1 %v1756_v24, 256  ;;  %1751 = vbcast.lane.b32.xlu0 %v1749_v44, 256 }
 0x34d   : > { %1856 = vbcast.lane.b32.xlu0 %v1854_v20, 256  ;;  %1835 = vbcast.lane.b32.xlu1 %v1833_v29, 256 }
 0x351   : > { %1765 = vbcast.lane.b32.xlu0 %v1763_v2, 256  ;;  %1772 = vbcast.lane.b32.xlu1 %v1770_v0, 256 }
 0x355   : > { %1863 = vbcast.lane.b32.xlu0 %v1861_v33, 256  ;;  %1870 = vbcast.lane.b32.xlu1 %v1868_v1, 256 }
 0x359   : > { %1884 = vbcast.lane.b32.xlu0 %v1882_v23, 256  ;;  %1877 = vbcast.lane.b32.xlu1 %v1875_v15, 256 }
 0x35d   : > { %2149 = vrot.lane.b32.xlu1 %v2451_v31, %s2732_s25 }
 0x38f   : > { %v1675_v57 = vpop.permute.xlu0 %1674  ;;  %v1682_v18 = vpop.permute.xlu1 %1681 }
 0x390   : > { %v1887_v40 = vmul.f32 %v2911_v13, %v1675_v57  ;;  %v1888_v54 = vmul.f32 %v1682_v18, %v2951_v42 }
 0x392   : > { %v1926_v34 = vsel %vm1918_vm13, %v1887_v40, 0.0  ;;  %v1933_v49 = vsel %vm1918_vm13, %v1888_v54, 0.0 }
 0x393   : > { %v1927_v60 = vrot.slane %v1926_v34, 4  ;;  %v1934_v50 = vrot.slane %v1933_v49, 4  ;;  %v1668_v35 = vpop.permute.xlu0 %1667  ;;  %v1689_v30 = vpop.permute.xlu1 %1688 }
 0x394   : > { %v1886_v6 = vmul.f32 %v1668_v35, %v2924_v21  ;;  %v1889_v55 = vmul.f32 %v2942_v36, %v1689_v30 }
 0x395   : > { %v1928_v3 = vadd.f32 %v1927_v60, %v1926_v34  ;;  %v1935_v25 = vadd.f32 %v1934_v50, %v1933_v49 }
 0x396   : > { %v1919_v17 = vsel %vm1918_vm13, %v1886_v6, 0.0  ;;  %v1940_v13 = vsel %vm1918_vm13, %v1889_v55, 0.0 }
 0x397   : > { %v1929_v52 = vrot.slane %v1928_v3, 2  ;;  %v1936_v42 = vrot.slane %v1935_v25, 2  ;;  %v1920_v59 = vrot.slane %v1919_v17, 4  ;;  %v1941_v48 = vrot.slane %v1940_v13, 4  ;;  %v1696_v26 = vpop.permute.xlu0 %1695  ;;  %v1787_v38 = vpop.permute.xlu1 %1786 }
 0x398   : > { %v1890_v11 = vmul.f32 %v1696_v26, %v2969_v61  ;;  %v1903_v47 = vmul.f32 %v2913_v14, %v1787_v38 }
 0x399   : > { %v1930_v8 = vadd.f32 %v1929_v52, %v1928_v3  ;;  %v1937_v21 = vadd.f32 %v1936_v42, %v1935_v25  ;;  %v1921_v53 = vadd.f32 %v1920_v59, %v1919_v17  ;;  %v1942_v36 = vadd.f32 %v1941_v48, %v1940_v13 }
 0x39a   : > { %v1947_v62 = vsel %vm1918_vm13, %v1890_v11, 0.0  ;;  %v2038_v28 = vsel %vm1918_vm13, %v1903_v47, 0.0 }
 0x39b   : > { %v1931_v43 = vrot.slane %v1930_v8, 1  ;;  %v1938_v4 = vrot.slane %v1937_v21, 1  ;;  %v1922_v41 = vrot.slane %v1921_v53, 2  ;;  %v1943_v45 = vrot.slane %v1942_v36, 2  ;;  %v1801_v24 = vpop.permute.xlu0 %1800  ;;  %v1794_v44 = vpop.permute.xlu1 %1793 }
 0x39c   : > { %v1948_v20 = vrot.slane %v1947_v62, 4  ;;  %v2039_v29 = vrot.slane %v2038_v28, 4  ;;  %v1905_v61 = vmul.f32 %v2944_v37, %v1801_v24  ;;  %v1904_v14 = vmul.f32 %v1794_v44, %v2954_v46 }
 0x39d   : > { %v3377_v2 = vadd.f32 %v1931_v43, %v1930_v8  ;;  %v1923_v0 = vadd.f32 %v1922_v41, %v1921_v53  ;;  %v1944_v33 = vadd.f32 %v1943_v45, %v1942_v36  ;;  %v3381_v57 = vadd.f32 %v1938_v4, %v1937_v21 }
 0x39e   : > { %v1949_v1 = vadd.f32 %v1948_v20, %v1947_v62  ;;  %v2040_v23 = vadd.f32 %v2039_v29, %v2038_v28  ;;  %v2052_v15 = vsel %vm1918_vm13, %v1905_v61, 0.0  ;;  %v2045_v31 = vsel %vm1918_vm13, %v1904_v14, 0.0 }
 0x39f   : > { %v1924_v18 = vrot.slane %v1923_v0, 1  ;;  %v2053_v40 = vrot.slane %v2052_v15, 4  ;;  %v2046_v54 = vrot.slane %v2045_v31, 4  ;;  %v1710_v34 = vpop.permute.xlu0 %1709  ;;  %v1703_v49 = vpop.permute.xlu1 %1702  ;;  %v1945_v30 = vrot.slane %v1944_v33, 1 }
 0x3a0   : > { %v1950_v37 = vrot.slane %v1949_v1, 2  ;;  %v2041_v60 = vrot.slane %v2040_v23, 2  ;;  %v1892_v46 = vmul.f32 %v1710_v34, %v2995_v19  ;;  %v1891_v50 = vmul.f32 %v2961_v56, %v1703_v49 }
 0x3a1   : > { %v3385_v35 = vadd.f32 %v1924_v18, %v1923_v0  ;;  %v2054_v6 = vadd.f32 %v2053_v40, %v2052_v15  ;;  %v2047_v55 = vadd.f32 %v2046_v54, %v2045_v31  ;;  %v3391_v62 = vadd.f32 %v1945_v30, %v1944_v33 }
 0x3a2   : > { %v1951_v3 = vadd.f32 %v1950_v37, %v1949_v1  ;;  %v2042_v25 = vadd.f32 %v2041_v60, %v2040_v23  ;;  %v1961_v17 = vsel %vm1918_vm13, %v1892_v46, 0.0  ;;  %v1954_v13 = vsel %vm1918_vm13, %v1891_v50, 0.0 }
 0x3a3   : > { %v2055_v52 = vrot.slane %v2054_v6, 2  ;;  %v2048_v42 = vrot.slane %v2047_v55, 2  ;;  %v1962_v59 = vrot.slane %v1961_v17, 4  ;;  %v1955_v48 = vrot.slane %v1954_v13, 4  ;;  %v1808_v26 = vpop.permute.xlu0 %1807  ;;  %v1780_v38 = vpop.permute.xlu1 %1779 }
 0x3a4   : > { %v1952_v19 = vrot.slane %v1951_v3, 1  ;;  %v2043_v11 = vrot.slane %v2042_v25, 1  ;;  %v1906_v56 = vmul.f32 %v1808_v26, %v2972_v63  ;;  %v1902_v47 = vmul.f32 %v1780_v38, %v2926_v22 }
 0x3a5   : > { %v2056_v8 = vadd.f32 %v2055_v52, %v2054_v6  ;;  %v2049_v21 = vadd.f32 %v2048_v42, %v2047_v55  ;;  %v1963_v53 = vadd.f32 %v1962_v59, %v1961_v17  ;;  %v1956_v36 = vadd.f32 %v1955_v48, %v1954_v13 }
 0x3a6   : > { %v3393_v28 = vadd.f32 %v1952_v19, %v1951_v3  ;;  %v2059_v43 = vsel %vm1918_vm13, %v1906_v56, 0.0  ;;  %v2031_v4 = vsel %vm1918_vm13, %v1902_v47, 0.0  ;;  %v3399_v0 = vadd.f32 %v2043_v11, %v2042_v25 }
 0x3a7   : > { %v2057_v41 = vrot.slane %v2056_v8, 1  ;;  %v2050_v45 = vrot.slane %v2049_v21, 1  ;;  %v1964_v24 = vrot.slane %v1963_v53, 2  ;;  %v1957_v44 = vrot.slane %v1956_v36, 2  ;;  %v1822_v20 = vpop.permute.xlu0 %1821  ;;  %v1717_v63 = vpop.permute.xlu1 %1716 }
 0x3a8   : > { %v2060_v29 = vrot.slane %v2059_v43, 4  ;;  %v2032_v22 = vrot.slane %v2031_v4, 4  ;;  %v1908_v61 = vmul.f32 %v1822_v20, %v2990_v16  ;;  %v1893_v14 = vmul.f32 %v2987_v12, %v1717_v63 }
 0x3a9   : > { %v3401_v33 = vadd.f32 %v2057_v41, %v2056_v8  ;;  %v1965_v1 = vadd.f32 %v1964_v24, %v1963_v53  ;;  %v1958_v23 = vadd.f32 %v1957_v44, %v1956_v36  ;;  %v3405_v54 = vadd.f32 %v2050_v45, %v2049_v21 }
 0x3aa   : > { %v2061_v15 = vadd.f32 %v2060_v29, %v2059_v43  ;;  %v2033_v31 = vadd.f32 %v2032_v22, %v2031_v4  ;;  %v2073_v18 = vsel %vm1918_vm13, %v1908_v61, 0.0  ;;  %v1968_v40 = vsel %vm1918_vm13, %v1893_v14, 0.0 }
 0x3ab   : > { %v1966_v34 = vrot.slane %v1965_v1, 1  ;;  %v2074_v49 = vrot.slane %v2073_v18, 4  ;;  %v1969_v37 = vrot.slane %v1968_v40, 4  ;;  %v1829_v16 = vpop.permute.xlu0 %1828  ;;  %v1815_v60 = vpop.permute.xlu1 %1814  ;;  %v1959_v55 = vrot.slane %v1958_v23, 1 }
 0x3ac   : > { %v2062_v12 = vrot.slane %v2061_v15, 2  ;;  %v2034_v46 = vrot.slane %v2033_v31, 2  ;;  %v1909_v50 = vmul.f32 %v2982_v10, %v1829_v16  ;;  %v1907_v30 = vmul.f32 %v2963_v58, %v1815_v60 }
 0x3ad   : > { %v3409_v6 = vadd.f32 %v1966_v34, %v1965_v1  ;;  %v2075_v3 = vadd.f32 %v2074_v49, %v2073_v18  ;;  %v1970_v25 = vadd.f32 %v1969_v37, %v1968_v40  ;;  %v3415_v43 = vadd.f32 %v1959_v55, %v1958_v23 }
 0x3ae   : > { %v2063_v17 = vadd.f32 %v2062_v12, %v2061_v15  ;;  %v2035_v13 = vadd.f32 %v2034_v46, %v2033_v31  ;;  %v2080_v52 = vsel %vm1918_vm13, %v1909_v50, 0.0  ;;  %v2066_v42 = vsel %vm1918_vm13, %v1907_v30, 0.0 }
 0x3af   : > { %v2076_v59 = vrot.slane %v2075_v3, 2  ;;  %v1971_v48 = vrot.slane %v1970_v25, 2  ;;  %v2081_v26 = vrot.slane %v2080_v52, 4  ;;  %v2067_v38 = vrot.slane %v2066_v42, 4  ;;  %v1738_v19 = vpop.permute.xlu0 %1737  ;;  %v1731_v11 = vpop.permute.xlu1 %1730 }
 0x3b0   : > { %v2064_v10 = vrot.slane %v2063_v17, 1  ;;  %v2036_v56 = vrot.slane %v2035_v13, 1  ;;  %v1896_v58 = vmul.f32 %v1738_v19, %v3052_v27  ;;  %v1895_v47 = vmul.f32 %v3019_v39, %v1731_v11 }
 0x3b1   : > { %v2077_v8 = vadd.f32 %v2076_v59, %v2075_v3  ;;  %v1972_v21 = vadd.f32 %v1971_v48, %v1970_v25  ;;  %v2082_v53 = vadd.f32 %v2081_v26, %v2080_v52  ;;  %v2068_v36 = vadd.f32 %v2067_v38, %v2066_v42 }
 0x3b2   : > { %v3417_v4 = vadd.f32 %v2064_v10, %v2063_v17  ;;  %v1989_v41 = vsel %vm1918_vm13, %v1896_v58, 0.0  ;;  %v1982_v45 = vsel %vm1918_vm13, %v1895_v47, 0.0  ;;  %v3423_v1 = vadd.f32 %v2036_v56, %v2035_v13  ;;  %v3601_v47 = vld [vmem:[#allocation4_spill] sm:$0xff] }
 0x3b3   : > { %v2078_v24 = vrot.slane %v2077_v8, 1  ;;  %v1973_v44 = vrot.slane %v1972_v21, 1  ;;  %v2083_v20 = vrot.slane %v2082_v53, 2  ;;  %v2069_v63 = vrot.slane %v2068_v36, 2  ;;  %v1745_v29 = vpop.permute.xlu0 %1744  ;;  %v1724_v27 = vpop.permute.xlu1 %1723 }
 0x3b4   : > { %v1990_v22 = vrot.slane %v1989_v41, 4  ;;  %v1983_v39 = vrot.slane %v1982_v45, 4  ;;  %v1897_v61 = vmul.f32 %v3047_v9, %v1745_v29  ;;  %v1894_v14 = vmul.f32 %v1724_v27, %v3029_v7 }
 0x3b5   : > { %v3425_v23 = vadd.f32 %v2078_v24, %v2077_v8  ;;  %v2084_v15 = vadd.f32 %v2083_v20, %v2082_v53  ;;  %v2070_v31 = vadd.f32 %v2069_v63, %v2068_v36  ;;  %v3429_v37 = vadd.f32 %v1973_v44, %v1972_v21 }
 0x3b6   : > { %v1991_v18 = vadd.f32 %v1990_v22, %v1989_v41  ;;  %v1984_v40 = vadd.f32 %v1983_v39, %v1982_v45  ;;  %v1996_v34 = vsel %vm1918_vm13, %v1897_v61, 0.0  ;;  %v1975_v49 = vsel %vm1918_vm13, %v1894_v14, 0.0 }
 0x3b7   : > { %v2085_v16 = vrot.slane %v2084_v15, 1  ;;  %v1997_v60 = vrot.slane %v1996_v34, 4  ;;  %v1976_v12 = vrot.slane %v1975_v49, 4  ;;  %v1843_v9 = vpop.permute.xlu0 %1842  ;;  %v1850_v46 = vpop.permute.xlu1 %1849  ;;  %v2071_v25 = vrot.slane %v2070_v31, 1 }
 0x3b8   : > { %v1992_v7 = vrot.slane %v1991_v18, 2  ;;  %v1985_v50 = vrot.slane %v1984_v40, 2  ;;  %v1911_v30 = vmul.f32 %v3013_v32, %v1843_v9  ;;  %v1912_v55 = vmul.f32 %v1850_v46, %v3044_v5 }
 0x3b9   : > { %v3433_v3 = vadd.f32 %v2085_v16, %v2084_v15  ;;  %v1998_v17 = vadd.f32 %v1997_v60, %v1996_v34  ;;  %v1977_v13 = vadd.f32 %v1976_v12, %v1975_v49  ;;  %v3439_v45 = vadd.f32 %v2071_v25, %v2070_v31  ;;  %v3602_v15 = vld [vmem:[#allocation3_spill] sm:$0xff] }
 0x3ba   : > { %v1993_v52 = vadd.f32 %v1992_v7, %v1991_v18  ;;  %v1986_v42 = vadd.f32 %v1985_v50, %v1984_v40  ;;  %v2094_v59 = vsel %vm1918_vm13, %v1911_v30, 0.0  ;;  %v2101_v48 = vsel %vm1918_vm13, %v1912_v55, 0.0  ;;  %v3603_v40 = vld [vmem:[#allocation2_spill] sm:$0xff] }
 0x3bb   : > { %v1999_v26 = vrot.slane %v1998_v17, 2  ;;  %v1978_v38 = vrot.slane %v1977_v13, 2  ;;  %v2095_v19 = vrot.slane %v2094_v59, 4  ;;  %v2102_v11 = vrot.slane %v2101_v48, 4  ;;  %v1752_v10 = vpop.permute.xlu0 %1751  ;;  %v1759_v56 = vpop.permute.xlu1 %1758 }
 0x3bc   : > { %v1994_v32 = vrot.slane %v1993_v52, 1  ;;  %v1987_v58 = vrot.slane %v1986_v42, 1  ;;  %v1898_v5 = vmul.f32 %v1752_v10, %v3077_v51  ;;  %v1899_v8 = vmul.f32 %v3601_v47, %v1759_v56 }
 0x3bd   : > { %v2000_v21 = vadd.f32 %v1999_v26, %v1998_v17  ;;  %v1979_v53 = vadd.f32 %v1978_v38, %v1977_v13  ;;  %v2096_v36 = vadd.f32 %v2095_v19, %v2094_v59  ;;  %v2103_v41 = vadd.f32 %v2102_v11, %v2101_v48  ;;  %v3605_v26 = vld [vmem:[#allocation7_spill] sm:$0xff] }
 0x3be   : > { %v3441_v24 = vadd.f32 %v1994_v32, %v1993_v52  ;;  %v2003_v44 = vsel %vm1918_vm13, %v1898_v5, 0.0  ;;  %v2010_v20 = vsel %vm1918_vm13, %v1899_v8, 0.0  ;;  %v3447_v31 = vadd.f32 %v1987_v58, %v1986_v42  ;;  %v3604_v42 = vld [vmem:[#allocation8_spill] sm:$0xff] }
 0x3bf   : > { %v2001_v63 = vrot.slane %v2000_v21, 1  ;;  %v1980_v29 = vrot.slane %v1979_v53, 1  ;;  %v2097_v27 = vrot.slane %v2096_v36, 2  ;;  %v2104_v22 = vrot.slane %v2103_v41, 2  ;;  %v1857_v39 = vpop.permute.xlu0 %1856  ;;  %v1836_v51 = vpop.permute.xlu1 %1835 }
 0x3c0   : > { %v2004_v61 = vrot.slane %v2003_v44, 4  ;;  %v2011_v14 = vrot.slane %v2010_v20, 4  ;;  %v1913_v18 = vmul.f32 %v3602_v15, %v1857_v39  ;;  %v1910_v34 = vmul.f32 %v1836_v51, %v3603_v40 }
 0x3c1   : > { %v3449_v49 = vadd.f32 %v2001_v63, %v2000_v21  ;;  %v2098_v16 = vadd.f32 %v2097_v27, %v2096_v36  ;;  %v2105_v60 = vadd.f32 %v2104_v22, %v2103_v41  ;;  %v1981_v50 = vadd.f32 %v1980_v29, %v1979_v53  ;;  %v3606_v29 = vld [vmem:[#allocation6_spill] sm:$0xff]  ;;  %v3607_v22 = vld [vmem:[#allocation5_spill] sm:$0xff] }
 0x3c2   : > { %v2005_v12 = vadd.f32 %v2004_v61, %v2003_v44  ;;  %v2012_v9 = vadd.f32 %v2011_v14, %v2010_v20  ;;  %v2108_v46 = vsel %vm1918_vm13, %v1913_v18, 0.0  ;;  %v2087_v7 = vsel %vm1918_vm13, %v1910_v34, 0.0 }
 0x3c3   : > { %v2099_v30 = vrot.slane %v2098_v16, 1  ;;  %v2109_v55 = vrot.slane %v2108_v46, 4  ;;  %v2088_v25 = vrot.slane %v2087_v7, 4  ;;  %v1766_v17 = vpop.permute.xlu0 %1765  ;;  %v1773_v13 = vpop.permute.xlu1 %1772  ;;  %v2106_v11 = vrot.slane %v2105_v60, 1 }
 0x3c4   : > { %v2006_v52 = vrot.slane %v2005_v12, 2  ;;  %v2013_v59 = vrot.slane %v2012_v9, 2  ;;  %v1900_v48 = vmul.f32 %v1766_v17, %v3604_v42  ;;  %v1901_v38 = vmul.f32 %v3605_v26, %v1773_v13  ;;  %v3608_v13 = vld [vmem:[#allocation9_spill] sm:$0xff] }
 0x3c5   : > { %v3455_v19 = vadd.f32 %v2099_v30, %v2098_v16  ;;  %v2110_v10 = vadd.f32 %v2109_v55, %v2108_v46  ;;  %v2089_v56 = vadd.f32 %v2088_v25, %v2087_v7  ;;  %v3461_v18 = vadd.f32 %v2106_v11, %v2105_v60 }
 0x3c6   : > { %v2007_v32 = vadd.f32 %v2006_v52, %v2005_v12  ;;  %v2014_v58 = vadd.f32 %v2013_v59, %v2012_v9  ;;  %v2017_v5 = vsel %vm1918_vm13, %v1900_v48, 0.0  ;;  %v2024_v47 = vsel %vm1918_vm13, %v1901_v38, 0.0  ;;  %v3609_v59 = vld [vmem:[#allocation10_spill] sm:$0xff] }
 0x3c7   : > { %v2111_v8 = vrot.slane %v2110_v10, 2  ;;  %v2090_v21 = vrot.slane %v2089_v56, 2  ;;  %v2018_v53 = vrot.slane %v2017_v5, 4  ;;  %v2025_v36 = vrot.slane %v2024_v47, 4  ;;  %v1864_v41 = vpop.permute.xlu0 %1863  ;;  %v1871_v44 = vpop.permute.xlu1 %1870 }
 0x3c8   : > { %v2008_v20 = vrot.slane %v2007_v32, 1  ;;  %v2015_v63 = vrot.slane %v2014_v58, 1  ;;  %v1914_v27 = vmul.f32 %v1864_v41, %v3606_v29  ;;  %v1915_v39 = vmul.f32 %v3607_v22, %v1871_v44 }
 0x3c9   : > { %v2112_v51 = vadd.f32 %v2111_v8, %v2110_v10  ;;  %v2091_v61 = vadd.f32 %v2090_v21, %v2089_v56  ;;  %v2019_v14 = vadd.f32 %v2018_v53, %v2017_v5  ;;  %v2026_v15 = vadd.f32 %v2025_v36, %v2024_v47 }
 0x3ca   : > { %v2009_v40 = vadd.f32 %v2008_v20, %v2007_v32  ;;  %v2115_v34 = vsel %vm1918_vm13, %v1914_v27, 0.0  ;;  %v2122_v16 = vsel %vm1918_vm13, %v1915_v39, 0.0  ;;  %v2016_v12 = vadd.f32 %v2015_v63, %v2014_v58 }
 0x3cb   : > { %v2113_v9 = vrot.slane %v2112_v51, 1  ;;  %v2020_v46 = vrot.slane %v2019_v14, 2  ;;  %v2027_v7 = vrot.slane %v2026_v15, 2  ;;  %v1885_v30 = vpop.permute.xlu0 %1884  ;;  %v1878_v55 = vpop.permute.xlu1 %1877  ;;  %v2116_v25 = vrot.slane %v2115_v34, 4 }
 0x3cc   : > { %v2123_v17 = vrot.slane %v2122_v16, 4  ;;  %v1917_v52 = vmul.f32 %v3608_v13, %v1885_v30  ;;  %v1916_v42 = vmul.f32 %v1878_v55, %v3609_v59  ;;  %v2092_v60 = vrot.slane %v2091_v61, 1 }
 0x3cd   : > { %v3467_v48 = vadd.f32 %v2113_v9, %v2112_v51  ;;  %v2021_v26 = vadd.f32 %v2020_v46, %v2019_v14  ;;  %v2028_v38 = vadd.f32 %v2027_v7, %v2026_v15  ;;  %v2117_v11 = vadd.f32 %v2116_v25, %v2115_v34 }
 0x3ce   : > { %v2124_v10 = vadd.f32 %v2123_v17, %v2122_v16  ;;  %v2136_v56 = vsel %vm1918_vm13, %v1917_v52, 0.0  ;;  %v2129_v32 = vsel %vm1918_vm13, %v1916_v42, 0.0 }
 0x3cf   : > { %v2022_v58 = vrot.slane %v2021_v26, 1  ;;  %v2029_v5 = vrot.slane %v2028_v38, 1  ;;  %v2137_v47 = vrot.slane %v2136_v56, 4  ;;  %v2130_v8 = vrot.slane %v2129_v32, 4  ;;  %v3471_v21 = vpop.permute.xlu1 %2149 }
 0x3d0   : > { %v2118_v53 = vrot.slane %v2117_v11, 2  ;;  %v2125_v36 = vrot.slane %v2124_v10, 2  ;;  %v2160_v41 = vadd.f32 %v3471_v21, %v1981_v50  ;;  %v2161_v44 = vadd.f32 %v3471_v21, %v3447_v31 }
 0x3d1   : > { %v2023_v20 = vadd.f32 %v2022_v58, %v2021_v26  ;;  %v2030_v63 = vadd.f32 %v2029_v5, %v2028_v38  ;;  %v2138_v29 = vadd.f32 %v2137_v47, %v2136_v56  ;;  %v2131_v27 = vadd.f32 %v2130_v8, %v2129_v32 }
 0x3d2   : > { %v2119_v22 = vadd.f32 %v2118_v53, %v2117_v11  ;;  %v2126_v39 = vadd.f32 %v2125_v36, %v2124_v10  ;;  %v2162_v51 = vadd.f32 %v3471_v21, %v3441_v24  ;;  %v2163_v14 = vadd.f32 %v3471_v21, %v3449_v49 }
 0x3d3   : > { %v2139_v15 = vrot.slane %v2138_v29, 2  ;;  %v2132_v34 = vrot.slane %v2131_v27, 2  ;;  %v2164_v16 = vadd.f32 %v3471_v21, %v2009_v40  ;;  %v2165_v50 = vadd.f32 %v3471_v21, %v2016_v12 }
 0x3d4   : > { %v2120_v9 = vrot.slane %v2119_v22, 1  ;;  %v2127_v31 = vrot.slane %v2126_v39, 1  ;;  %v2166_v46 = vadd.f32 %v3471_v21, %v2023_v20  ;;  %v2167_v7 = vadd.f32 %v3471_v21, %v2030_v63 }
 0x3d5   : > { %v2140_v30 = vadd.f32 %v2139_v15, %v2138_v29  ;;  %v2133_v55 = vadd.f32 %v2132_v34, %v2131_v27  ;;  %v2230_v25 = vrot.slane %v2161_v44, 7  ;;  %v2232_v17 = vrot.slane %v2162_v51, 6 }
 0x3d6   : > { %v2093_v24 = vadd.f32 %v2092_v60, %v2091_v61  ;;  %v3484_v13 = vadd.f32 %v2120_v9, %v2119_v22  ;;  %v3486_v49 = vadd.f32 %v2127_v31, %v2126_v39  ;;  %v2234_v52 = vrot.slane %v2163_v14, 5 }
 0x3d7   : > { %v2141_v59 = vrot.slane %v2140_v30, 1  ;;  %v2134_v40 = vrot.slane %v2133_v55, 1  ;;  %v2231_v12 = vsel %vm1562_vm1, %v2230_v25, %v2160_v41  ;;  %v2236_v42 = vrot.slane %v2164_v16, 4 }
 0x3d8   : > { %v2233_v26 = vsel %vm1564_vm2, %v2232_v17, %v2231_v12  ;;  %v2238_v38 = vrot.slane %v2165_v50, 3  ;;  %v2240_v11 = vrot.slane %v2166_v46, 2  ;;  %v2242_v10 = vrot.slane %v2167_v7, 1 }
 0x3d9   : > { %v2142_v56 = vadd.f32 %v2141_v59, %v2140_v30  ;;  %v2235_v32 = vsel %vm1566_vm3, %v2234_v52, %v2233_v26  ;;  %v2152_v61 = vadd.f32 %v3471_v21, %v3385_v35  ;;  %v2153_v60 = vadd.f32 %v3471_v21, %v3377_v2 }
 0x3da   : > { %v2237_v58 = vsel %vm1568_vm4, %v2236_v42, %v2235_v32  ;;  %v2154_v5 = vadd.f32 %v3471_v21, %v3381_v57  ;;  %v2155_v47 = vadd.f32 %v3471_v21, %v3391_v62  ;;  %v2156_v8 = vadd.f32 %v3471_v21, %v3393_v28 }
 0x3db   : > { %v2239_v53 = vsel %vm1570_vm5, %v2238_v38, %v2237_v58  ;;  %v2157_v36 = vadd.f32 %v3471_v21, %v3415_v43  ;;  %v2158_v35 = vadd.f32 %v3471_v21, %v3409_v6  ;;  %v2159_v2 = vadd.f32 %v3471_v21, %v3429_v37 }
 0x3dc   : > { %v2135_v41 = vadd.f32 %v2134_v40, %v2133_v55  ;;  %v2241_v57 = vsel %vm1572_vm6, %v2240_v11, %v2239_v53  ;;  %v2216_v44 = vrot.slane %v2153_v60, 7  ;;  %v2218_v20 = vrot.slane %v2154_v5, 6 }
 0x3dd   : > { %v2243_v62 = vsel %vm1574_vm7, %v2242_v10, %v2241_v57  ;;  %v2220_v63 = vrot.slane %v2155_v47, 5  ;;  %v2222_v28 = vrot.slane %v2156_v8, 4  ;;  %v2224_v29 = vrot.slane %v2157_v36, 3 }
 0x3de   : > { %2274 = vrot.lane.b32.xlu1 %v2243_v62, %s2733_s26  ;;  %v2217_v43 = vsel %vm1562_vm1, %v2216_v44, %v2152_v61  ;;  %v2226_v27 = vrot.slane %v2158_v35, 2  ;;  %v2228_v6 = vrot.slane %v2159_v2, 1  ;;  %v2169_v37 = vadd.f32 %v3471_v21, %v3399_v0 }
 0x3df   : > { %v2219_v22 = vsel %vm1564_vm2, %v2218_v20, %v2217_v43  ;;  %v2170_v39 = vadd.f32 %v3471_v21, %v3405_v54  ;;  %v2171_v51 = vadd.f32 %v3471_v21, %v3401_v33  ;;  %v2172_v14 = vadd.f32 %v3471_v21, %v3417_v4 }
 0x3e0   : > { %v2221_v15 = vsel %vm1566_vm3, %v2220_v63, %v2219_v22  ;;  %v2168_v34 = vadd.f32 %v3471_v21, %v3423_v1  ;;  %v2173_v16 = vadd.f32 %v3471_v21, %v3439_v45  ;;  %v2174_v0 = vadd.f32 %v3471_v21, %v3425_v23 }
 0x3e1   : > { %v2223_v50 = vsel %vm1568_vm4, %v2222_v28, %v2221_v15  ;;  %v2175_v54 = vadd.f32 %v3471_v21, %v3433_v3  ;;  %v2244_v33 = vrot.slane %v2169_v37, 7  ;;  %v2246_v9 = vrot.slane %v2170_v39, 6 }
 0x3e2   : > { %v2225_v4 = vsel %vm1570_vm5, %v2224_v29, %v2223_v50  ;;  %v2248_v31 = vrot.slane %v2171_v51, 5  ;;  %v2250_v46 = vrot.slane %v2172_v14, 4  ;;  %v2252_v7 = vrot.slane %v2173_v16, 3 }
 0x3e3   : > { %v2227_v1 = vsel %vm1572_vm6, %v2226_v27, %v2225_v4  ;;  %v2245_v30 = vsel %vm1562_vm1, %v2244_v33, %v2168_v34  ;;  %v2254_v45 = vrot.slane %v2174_v0, 2  ;;  %v2176_v55 = vadd.f32 %v3471_v21, %v2093_v24 }
 0x3e4   : > { %v2229_v23 = vsel %vm1574_vm7, %v2228_v6, %v2227_v1  ;;  %v2247_v25 = vsel %vm1564_vm2, %v2246_v9, %v2245_v30  ;;  %v2177_v3 = vadd.f32 %v3471_v21, %v3455_v19  ;;  %v2178_v17 = vadd.f32 %v3471_v21, %v3461_v18 }
 0x3e5   : > { %2272 = vrot.lane.b32.xlu0 %v2229_v23, %s2733_s26  ;;  %v2249_v52 = vsel %vm1566_vm3, %v2248_v31, %v2247_v25  ;;  %v2179_v59 = vadd.f32 %v3471_v21, %v3467_v48  ;;  %v2180_v24 = vadd.f32 %v3471_v21, %v3484_v13  ;;  %v2181_v40 = vadd.f32 %v3471_v21, %v3486_v49 }
 0x3e6   : > { %v2251_v12 = vsel %vm1568_vm4, %v2250_v46, %v2249_v52  ;;  %v2182_v19 = vadd.f32 %v3471_v21, %v2135_v41  ;;  %v2183_v42 = vadd.f32 %v3471_v21, %v2142_v56  ;;  %v2258_v18 = vrot.slane %v2177_v3, 7 }
 0x3e7   : > { %v2253_v26 = vsel %vm1570_vm5, %v2252_v7, %v2251_v12  ;;  %v2256_v38 = vrot.slane %v2175_v54, 1  ;;  %v2260_v11 = vrot.slane %v2178_v17, 6  ;;  %v2264_v10 = vrot.slane %v2180_v24, 4 }
 0x3e8   : > { %v2255_v48 = vsel %vm1572_vm6, %v2254_v45, %v2253_v26  ;;  %v2259_v13 = vsel %vm1562_vm1, %v2258_v18, %v2176_v55  ;;  %v2262_v32 = vrot.slane %v2179_v59, 5  ;;  %v2266_v61 = vrot.slane %v2181_v40, 3 }
 0x3e9   : > { %v2257_v49 = vsel %vm1574_vm7, %v2256_v38, %v2255_v48  ;;  %v2261_v60 = vsel %vm1564_vm2, %v2260_v11, %v2259_v13  ;;  %v2268_v58 = vrot.slane %v2182_v19, 2  ;;  %v2270_v56 = vrot.slane %v2183_v42, 1 }
 0x3ea   : > { %2276 = vrot.lane.b32.xlu0 %v2257_v49, %s2733_s26  ;;  %v2263_v21 = vsel %vm1566_vm3, %v2262_v32, %v2261_v60 }
 0x3eb   : > { %v2265_v5 = vsel %vm1568_vm4, %v2264_v10, %v2263_v21 }
 0x3ec   : > { %v2267_v47 = vsel %vm1570_vm5, %v2266_v61, %v2265_v5 }
 0x3ed   : > { %v2269_v8 = vsel %vm1572_vm6, %v2268_v58, %v2267_v47 }
 0x3ee   : > { %v2271_v53 = vsel %vm1574_vm7, %v2270_v56, %v2269_v8 }
 0x3ef   : > { %2278 = vrot.lane.b32.xlu1 %v2271_v53, %s2733_s26 }
 0x450   : > { %v2275_v36 = vpop.permute.xlu1 %2274 }
 0x451   : > { %2286 = vst.msk [vmem:[%s297_s29 + $0x8] sm:$0xff] %vm2284_vm14, %v2275_v36 }
 0x457   : > { %v2273_v35 = vpop.permute.xlu0 %2272 }
 0x458   : > { %2285 = vst.msk [vmem:[%s297_s29] sm:$0xff] %vm2284_vm14, %v2273_v35 }
 0x45c   : > { %v2277_v2 = vpop.permute.xlu0 %2276 }
 0x45d   : > { %2287 = vst.msk [vmem:[%s297_s29 + $0x10] sm:$0xff] %vm2284_vm14, %v2277_v2 }
 0x461   : > { %v2279_v41 = vpop.permute.xlu1 %2278 }
 0x462   : > { %2288 = vst.msk [vmem:[%s297_s29 + $0x18] sm:$0xff] %vm2284_vm14, %v2279_v41 }
 0x463 PF: > { %s16_s21 = sadd.s32 1, %s2727_s21  }
 0x464   : > { %p13_p5 = scmp.ge.s32.totalorder %s16_s21, 4  }
 0x466   :  { %15 = sbr.rel (!%p13_p5) target bundleno = 1 (0x1), region = 80 }

</bundles_post_ra>
